<compile_context>
chip_gen: v5e
topology: v5e:2x2
jax: 0.10.0
libtpu: 0.0.40
codegen_flags: <defaults>
</compile_context>

<pallas_src>
import functools
import math

import jax
import jax.numpy as jnp
from jax.experimental import pallas as pl
from jax.experimental.pallas import tpu as pltpu


# ----------------------------------------------------------------------------
# Synthetic config (stand-in for yolact-style `cfg`)
# ----------------------------------------------------------------------------
NUM_CLASSES = 5
NUM_RAYS = 8
MASK_DIM = 8
FPN_FEATURES = 32
FPN_NUM_DOWNSAMPLE = 1
BACKBONE_CHANNELS = [16, 24, 32]          # outputs of the 3 selected backbone stages
STRIDES = [4, 8, 16, 32]                  # per FPN level (incl. extra downsample)
REGRESS_RANGES = [(0, 16), (16, 32), (32, 64), (64, 128)]
REGRESS_FACTOR = 1.0
MAX_SIZE = (64, 64)
CENTER_ALPHA = 1.0                        # != 0  ->  center is NOT replaced by ones

COMPUTE_DTYPE = jnp.bfloat16              # MXU operand dtype (f32 accumulation)


def _round_up(x, m):
    return (x + m - 1) // m * m


# ----------------------------------------------------------------------------
# Pallas kernel: direct NHWC conv (in-kernel im2col) + bias + activation
# ----------------------------------------------------------------------------
def _conv_nhwc_kernel(x_ref, w_ref, b_ref, o_ref, *, kh, kw, tr, ow,
                      act, ratio, head_splits):
    """One grid step = one image x one tile of `tr` output rows.

    x_ref: (1, Hp, Wp, Cin)    padded input image (stride already folded to 1)
    w_ref: (kh*kw, Cin, Cout)  weights (bf16)
    b_ref: (1, Cout)           bias (f32)
    o_ref: (1, tr*ow, Cout)    output rows (spatially flattened NHWC)
    """
    cin = x_ref.shape[-1]
    cout = w_ref.shape[-1]
    rows = tr * ow
    r0 = pl.multiple_of(pl.program_id(1) * tr, tr)

    acc = jnp.zeros((rows, cout), jnp.float32)
    for t in range(kh * kw):                      # short static loop, fully unrolled
        i, j = divmod(t, kw)
        win = x_ref[0, pl.ds(r0 + i, tr), pl.ds(j, ow), :]       # (tr, ow, cin)
        acc = acc + jnp.dot(win.reshape(rows, cin), w_ref[t],
                            preferred_element_type=jnp.float32)
    acc = acc + b_ref[...]

    if act == "relu":
        acc = jnp.maximum(acc, 0.0)
    elif act == "heads":
        # fused conf|center|polygon|mask heads:
        #   columns [p0, m0): sigmoid * ratio   (polygon)
        #   columns [m0, m1): tanh              (mask)
        #   everything else : identity          (conf, center, zero padding)
        p0, m0, m1 = head_splits
        col = jax.lax.broadcasted_iota(jnp.int32, acc.shape, 1)
        acc = jnp.where((col >= p0) & (col < m0), jax.nn.sigmoid(acc) * ratio,
                        jnp.where((col >= m0) & (col < m1), jnp.tanh(acc), acc))

    o_ref[0] = acc.astype(o_ref.dtype)


def _space_to_depth(xp, wk, s, oh, ow):
    """Rewrite a stride-s conv as a stride-1 conv on a phase-packed input.

    xp: (N, Hp, Wp, C) spatially padded input, wk: (kh, kw, C, Cout).
    Returns (xs, ws, kh2, kw2) such that a stride-1 (kh2, kw2) conv over xs with
    weights ws produces the same (oh, ow) output.
    """
    n, hp, wp, c = xp.shape
    kh, kw, _, cout = wk.shape
    kh2, kw2 = -(-kh // s), -(-kw // s)
    ht, wt = oh + kh2 - 1, ow + kw2 - 1
    xp = jnp.pad(xp, ((0, 0), (0, max(0, ht * s - hp)),
                      (0, max(0, wt * s - wp)), (0, 0)))
    phases = [xp[:, pi::s, pj::s, :][:, :ht, :wt, :]
              for pi in range(s) for pj in range(s)]
    xs = jnp.concatenate(phases, axis=-1)                       # (n, ht, wt, s*s*c)

    zero = jnp.zeros((c, cout), wk.dtype)
    w_rows = []
    for a in range(kh2):
        w_cols = []
        for bb in range(kw2):
            taps = [wk[a * s + pi, bb * s + pj]
                    if (a * s + pi < kh and bb * s + pj < kw) else zero
                    for pi in range(s) for pj in range(s)]
            w_cols.append(jnp.concatenate(taps, axis=0))        # (s*s*c, cout)
        w_rows.append(jnp.stack(w_cols, axis=0))
    ws = jnp.stack(w_rows, axis=0)                              # (kh2, kw2, s*s*c, cout)
    return xs, ws, kh2, kw2


def conv_nhwc(x, w, b, *, stride=1, padding=0, act="none", ratio=1.0,
              head_splits=(0, 0, 0), out_dtype=None):
    """x: (N, H, W, Cin) NHWC.  w: (Cout, Cin, kh, kw) torch layout.  b: (Cout,)."""
    n, h, width, _ = x.shape
    cout, _, kh, kw = w.shape
    oh = (h + 2 * padding - kh) // stride + 1
    ow = (width + 2 * padding - kw) // stride + 1
    out_dtype = COMPUTE_DTYPE if out_dtype is None else out_dtype

    xp = x.astype(COMPUTE_DTYPE)
    if padding:
        xp = jnp.pad(xp, ((0, 0), (padding, padding), (padding, padding), (0, 0)))
    wk = jnp.transpose(w, (2, 3, 1, 0)).astype(COMPUTE_DTYPE)   # (kh, kw, cin, cout)
    if stride > 1:
        xp, wk, kh, kw = _space_to_depth(xp, wk, stride, oh, ow)
    _, hp, wp, cin2 = xp.shape
    wk = wk.reshape(kh * kw, cin2, cout)
    b2 = jnp.asarray(b, jnp.float32).reshape(1, cout)

    # output-row tiling: keep tiles <= ~256 rows while retaining >=2 grid steps
    tr = oh
    while tr * ow > 256 and tr % 2 == 0:
        tr //= 2

    out = pl.pallas_call(
        functools.partial(_conv_nhwc_kernel, kh=kh, kw=kw, tr=tr, ow=ow,
                          act=act, ratio=float(ratio),
                          head_splits=tuple(head_splits)),
        out_shape=jax.ShapeDtypeStruct((n, oh * ow, cout), out_dtype),
        grid=(n, oh // tr),
        in_specs=[
            pl.BlockSpec((1, hp, wp, cin2), lambda ni, ri: (ni, 0, 0, 0)),
            pl.BlockSpec((kh * kw, cin2, cout), lambda ni, ri: (0, 0, 0)),
            pl.BlockSpec((1, cout), lambda ni, ri: (0, 0)),
        ],
        out_specs=pl.BlockSpec((1, tr * ow, cout), lambda ni, ri: (ni, ri, 0)),
        compiler_params=pltpu.CompilerParams(
            dimension_semantics=("parallel", "parallel")),
    )(xp, wk, b2)
    return out.reshape(n, oh, ow, cout)


# ----------------------------------------------------------------------------
# Pallas kernel: fused bilinear upsample (align_corners=False) + lateral add
# ----------------------------------------------------------------------------
def _upsample_add_kernel(r_ref, x_ref, lat_ref, o_ref):
    up = jnp.dot(r_ref[...], x_ref[0], preferred_element_type=jnp.float32)
    o_ref[0] = (up + lat_ref[0].astype(jnp.float32)).astype(o_ref.dtype)


def _linear_weights(out_size, in_size):
    scale = in_size / out_size
    o = jnp.arange(out_size, dtype=jnp.float32)
    src = jnp.maximum((o + 0.5) * scale - 0.5, 0.0)
    i0 = jnp.minimum(jnp.floor(src).astype(jnp.int32), in_size - 1)
    i1 = jnp.minimum(i0 + 1, in_size - 1)
    lam = src - i0.astype(jnp.float32)
    R = jnp.zeros((out_size, in_size), jnp.float32)
    R = R.at[jnp.arange(out_size), i0].add(1.0 - lam)
    R = R.at[jnp.arange(out_size), i1].add(lam)
    return R


def upsample_add(x_small, lat):
    """PyTorch-style bilinear (align_corners=False) resize of x_small to lat, + lat."""
    n, h2, w2, c = x_small.shape
    _, h, w, _ = lat.shape
    R = jnp.kron(_linear_weights(h, h2), _linear_weights(w, w2)).astype(COMPUTE_DTYPE)
    xs = x_small.reshape(n, h2 * w2, c)
    lf = lat.reshape(n, h * w, c)
    out = pl.pallas_call(
        _upsample_add_kernel,
        out_shape=jax.ShapeDtypeStruct((n, h * w, c), lat.dtype),
        grid=(n,),
        in_specs=[
            pl.BlockSpec((h * w, h2 * w2), lambda i: (0, 0)),
            pl.BlockSpec((1, h2 * w2, c), lambda i: (i, 0, 0)),
            pl.BlockSpec((1, h * w, c), lambda i: (i, 0, 0)),
        ],
        out_specs=pl.BlockSpec((1, h * w, c), lambda i: (i, 0, 0)),
        compiler_params=pltpu.CompilerParams(dimension_semantics=("parallel",)),
    )(R, xs, lf)
    return out.reshape(n, h, w, c)


# ----------------------------------------------------------------------------
# Deterministic parameter construction (Xavier-uniform weights, zero biases)
# ----------------------------------------------------------------------------
def _conv_params(key, cin, cout, k):
    fan_in = cin * k * k
    fan_out = cout * k * k
    bound = math.sqrt(6.0 / (fan_in + fan_out))
    w = jax.random.uniform(key, (cout, cin, k, k), jnp.float32, -bound, bound)
    return {"w": w, "b": jnp.zeros((cout,), jnp.float32)}


def init_params(key):
    keys = iter(jax.random.split(key, 64))
    p = {}
    # synthetic backbone: stem + 3 stages (stride-2 3x3 convs)
    p["stem"] = _conv_params(next(keys), 3, 16, 3)
    p["layer1"] = _conv_params(next(keys), 16, BACKBONE_CHANNELS[0], 3)
    p["layer2"] = _conv_params(next(keys), BACKBONE_CHANNELS[0], BACKBONE_CHANNELS[1], 3)
    p["layer3"] = _conv_params(next(keys), BACKBONE_CHANNELS[1], BACKBONE_CHANNELS[2], 3)
    # FPN: lat (1x1) built from reversed in_channels, pred (3x3), conv downsample
    p["fpn_lat"] = [_conv_params(next(keys), c, FPN_FEATURES, 1)
                    for c in reversed(BACKBONE_CHANNELS)]
    p["fpn_pred"] = [_conv_params(next(keys), FPN_FEATURES, FPN_FEATURES, 3)
                     for _ in BACKBONE_CHANNELS]
    p["fpn_down"] = [_conv_params(next(keys), FPN_FEATURES, FPN_FEATURES, 3)
                     for _ in range(FPN_NUM_DOWNSAMPLE)]
    # proto net (include_last_relu=False; forward applies torch.relu afterwards)
    p["proto0"] = _conv_params(next(keys), FPN_FEATURES, FPN_FEATURES, 3)
    p["proto1"] = _conv_params(next(keys), FPN_FEATURES, MASK_DIM, 1)
    # shared prediction module (share_prediction_module=True -> one weight set)
    p["head_up"] = _conv_params(next(keys), FPN_FEATURES, FPN_FEATURES, 3)
    p["conf"] = _conv_params(next(keys), FPN_FEATURES, NUM_CLASSES, 3)
    p["center"] = _conv_params(next(keys), FPN_FEATURES, 1, 3)
    p["polygon"] = _conv_params(next(keys), FPN_FEATURES, NUM_RAYS, 3)
    p["mask"] = _conv_params(next(keys), FPN_FEATURES, MASK_DIM, 3)
    return p


# ----------------------------------------------------------------------------
# ConvexMask forward (training-mode return path)
# ----------------------------------------------------------------------------
def convexmask_forward(params, x):
    _, _, img_h, img_w = x.shape
    xh = jnp.transpose(x, (0, 2, 3, 1))        # single NCHW -> NHWC layout change

    def conv(p, inp, **kwargs):
        pr = params[p] if isinstance(p, str) else p
        return conv_nhwc(inp, pr["w"], pr["b"], **kwargs)

    # --- backbone ---
    c = conv("stem", xh, stride=2, padding=1, act="relu")
    f1 = conv("layer1", c, stride=2, padding=1, act="relu")
    f2 = conv("layer2", f1, stride=2, padding=1, act="relu")
    f3 = conv("layer3", f2, stride=2, padding=1, act="relu")
    convouts = [f1, f2, f3]

    # --- FPN ---
    n = len(convouts)
    fpn_out = [None] * n
    x_up = None
    for j in reversed(range(n)):
        lat = conv(params["fpn_lat"][n - 1 - j], convouts[j])
        if j < n - 1:
            x_up = upsample_add(x_up, lat)     # fused bilinear resize + lateral add
        else:
            x_up = lat
        fpn_out[j] = x_up
    for i in range(n):                         # pred_layers[i] pairs with level n-1-i
        jj = n - 1 - i
        fpn_out[jj] = conv(params["fpn_pred"][i], fpn_out[jj], padding=1, act="relu")
    for d in range(FPN_NUM_DOWNSAMPLE):
        fpn_out.append(conv(params["fpn_down"][d], fpn_out[-1], stride=2, padding=1))

    # --- proto branch (proto_src = 0, eval_mask_branch=True, mask_proto_bias=False) ---
    proto = conv("proto0", fpn_out[0], padding=1, act="relu")
    proto_out = conv("proto1", proto, act="relu", out_dtype=jnp.float32)
    # already NHWC: (B, H, W, mask_dim) == torch .permute(0, 2, 3, 1)

    # --- shared prediction heads: conf/center/polygon/mask fused into one conv ---
    nc, nr, md = NUM_CLASSES, NUM_RAYS, MASK_DIM
    head_w = jnp.concatenate([params[k]["w"]
                              for k in ("conf", "center", "polygon", "mask")], axis=0)
    head_b = jnp.concatenate([params[k]["b"]
                              for k in ("conf", "center", "polygon", "mask")], axis=0)
    n_real = nc + 1 + nr + md
    n_pad = _round_up(n_real, 128)             # lane-dense output store
    head_w = jnp.pad(head_w, ((0, n_pad - n_real), (0, 0), (0, 0), (0, 0)))
    head_b = jnp.pad(head_b, ((0, n_pad - n_real),))
    head_p = {"w": head_w, "b": head_b}
    splits = (nc + 1, nc + 1 + nr, n_real)     # polygon start, mask start, mask end

    confs, centers, polys, masks, points_l, rr_l = [], [], [], [], [], []
    for idx, feat in enumerate(fpn_out):
        B, ch, cw, _ = feat.shape
        up = conv("head_up", feat, padding=1, act="relu")

        rr = [r * REGRESS_FACTOR for r in REGRESS_RANGES[idx]]
        ratio = min(math.sqrt((rr[1] / MAX_SIZE[0]) ** 2 + (rr[1] / MAX_SIZE[0]) ** 2),
                    math.sqrt(2.0))

        heads = conv(head_p, up, padding=1, act="heads", ratio=ratio,
                     head_splits=splits, out_dtype=jnp.float32)
        hf = heads.reshape(B, ch * cw, n_pad)              # NHWC flatten == permute+view
        confs.append(hf[..., :nc])
        centers.append(hf[..., nc:nc + 1])
        polys.append(hf[..., nc + 1:nc + 1 + nr])          # sigmoid * ratio (in-kernel)
        masks.append(hf[..., nc + 1 + nr:n_real])          # tanh (in-kernel)

        # points (get_points_single): torch.meshgrid(y, x) default 'ij' indexing
        stride = STRIDES[idx]
        xr = jnp.arange(0, cw * stride, stride, dtype=jnp.float32)
        yr = jnp.arange(0, ch * stride, stride, dtype=jnp.float32)
        yy, xx = jnp.meshgrid(yr, xr, indexing="ij")
        pts = jnp.stack((xx.reshape(-1), yy.reshape(-1)), axis=-1) + (stride // 2)
        pts = pts / jnp.array([img_w, img_h], jnp.float32)
        points_l.append(pts)
        rr_l.append(jnp.broadcast_to(jnp.asarray(rr, jnp.float32)[None], pts.shape))

    pred_outs = {
        "conf": jnp.concatenate(confs, axis=-2),
        "center": jnp.concatenate(centers, axis=-2),
        "polygon": jnp.concatenate(polys, axis=-2),
        "mask": jnp.concatenate(masks, axis=-2),
        "points": jnp.concatenate(points_l, axis=-2),
        "regress_ranges": jnp.concatenate(rr_l, axis=-2),
        "proto": proto_out,
        "img_size": (img_h, img_w),
    }
    # TODO(synk): eval-mode Detect() NMS post-processing has no clean Pallas
    # equivalent here; the training-mode dict is returned instead.
    return pred_outs


# ----------------------------------------------------------------------------
if __name__ == "__main__":
    key = jax.random.PRNGKey(0)
    kx, kp = jax.random.split(key)
    x = jax.random.normal(kx, (2, 3, 64, 64), jnp.float32)   # [batch, 3, img_h, img_w]
    params = init_params(kp)

    out = convexmask_forward(params, x)
    jax.block_until_ready({k: v for k, v in out.items() if k != "img_size"})

    # quick sanity on shapes implied by the module
    assert out["conf"].shape == (2, 340, NUM_CLASSES)
    assert out["center"].shape == (2, 340, 1)
    assert out["polygon"].shape == (2, 340, NUM_RAYS)
    assert out["mask"].shape == (2, 340, MASK_DIM)
    assert out["points"].shape == (340, 2)
    assert out["regress_ranges"].shape == (340, 2)
    assert out["proto"].shape == (2, 16, 16, MASK_DIM)

    print("KERNEL_OK")
</pallas_src>

<mosaic_0001>
module attributes {stable_mosaic.version = 11 : i64} {
  func.func @_conv_nhwc_kernel(%arg0: i32, %arg1: i32, %arg2: memref<1x33x33x12xbf16, #tpu.memory_space<vmem>>, %arg3: memref<4x12x16xbf16, #tpu.memory_space<vmem>>, %arg4: memref<1x16xf32, #tpu.memory_space<vmem>>, %arg5: memref<1x256x16xbf16, #tpu.memory_space<vmem>>) attributes {dimension_semantics = [#tpu.dimension_semantics<parallel>, #tpu.dimension_semantics<parallel>], iteration_bounds = array<i64: 2, 4>, scalar_prefetch = 0 : i64, scratch_operands = 0 : i64, tpu.core_type = #tpu.core_type<tc>, window_params = [{transform_indices = @transform_0, window_bounds = array<i64: 1, 33, 33, 12>}, {pipeline_mode = #tpu.pipeline_mode<synchronous>, transform_indices = @transform_1, window_bounds = array<i64: 4, 12, 16>}, {pipeline_mode = #tpu.pipeline_mode<synchronous>, transform_indices = @transform_2, window_bounds = array<i64: 1, 16>}, {transform_indices = @transform_3, window_bounds = array<i64: 1, 256, 16>}]} {
    %c8_i32 = arith.constant 8 : i32
    %0 = arith.muli %arg1, %c8_i32 : i32
    %1 = tpu.assume_multiple %0, 8 : i32
    %cst = arith.constant 0.000000e+00 : f32
    %2 = vector.broadcast %cst : f32 to vector<256x16xf32>
    %c0_i32 = arith.constant 0 : i32
    %3 = arith.addi %1, %c0_i32 : i32
    %c0 = arith.constant 0 : index
    %4 = arith.index_cast %3 : i32 to index
    %c0_0 = arith.constant 0 : index
    %c0_1 = arith.constant 0 : index
    %5 = vector.load %arg2[%c0, %4, %c0_0, %c0_1] : memref<1x33x33x12xbf16, #tpu.memory_space<vmem>>, vector<1x8x32x12xbf16>
    %6 = vector.shape_cast %5 : vector<1x8x32x12xbf16> to vector<8x32x12xbf16>
    %7 = vector.shape_cast %6 : vector<8x32x12xbf16> to vector<256x12xbf16>
    %c0_2 = arith.constant 0 : index
    %c0_3 = arith.constant 0 : index
    %c0_4 = arith.constant 0 : index
    %8 = vector.load %arg3[%c0_2, %c0_3, %c0_4] : memref<4x12x16xbf16, #tpu.memory_space<vmem>>, vector<1x12x16xbf16>
    %9 = vector.shape_cast %8 : vector<1x12x16xbf16> to vector<12x16xbf16>
    %cst_5 = arith.constant dense<0.000000e+00> : vector<256x16xf32>
    %10 = tpu.matmul %7, %9, %cst_5 {dimension_numbers = #tpu.dot_dimension_numbers<[1], [0], [0], [1], [0, 0, 1, 1], [], []>} : vector<256x12xbf16>, vector<12x16xbf16>, vector<256x16xf32> -> vector<256x16xf32>
    %11 = arith.addf %2, %10 : vector<256x16xf32>
    %c0_i32_6 = arith.constant 0 : i32
    %12 = arith.addi %1, %c0_i32_6 : i32
    %c0_7 = arith.constant 0 : index
    %13 = arith.index_cast %12 : i32 to index
    %c1 = arith.constant 1 : index
    %c0_8 = arith.constant 0 : index
    %14 = vector.load %arg2[%c0_7, %13, %c1, %c0_8] : memref<1x33x33x12xbf16, #tpu.memory_space<vmem>>, vector<1x8x32x12xbf16>
    %15 = vector.shape_cast %14 : vector<1x8x32x12xbf16> to vector<8x32x12xbf16>
    %16 = vector.shape_cast %15 : vector<8x32x12xbf16> to vector<256x12xbf16>
    %c1_9 = arith.constant 1 : index
    %c0_10 = arith.constant 0 : index
    %c0_11 = arith.constant 0 : index
    %17 = vector.load %arg3[%c1_9, %c0_10, %c0_11] : memref<4x12x16xbf16, #tpu.memory_space<vmem>>, vector<1x12x16xbf16>
    %18 = vector.shape_cast %17 : vector<1x12x16xbf16> to vector<12x16xbf16>
    %cst_12 = arith.constant dense<0.000000e+00> : vector<256x16xf32>
    %19 = tpu.matmul %16, %18, %cst_12 {dimension_numbers = #tpu.dot_dimension_numbers<[1], [0], [0], [1], [0, 0, 1, 1], [], []>} : vector<256x12xbf16>, vector<12x16xbf16>, vector<256x16xf32> -> vector<256x16xf32>
    %20 = arith.addf %11, %19 : vector<256x16xf32>
    %c1_i32 = arith.constant 1 : i32
    %21 = arith.addi %1, %c1_i32 : i32
    %c0_13 = arith.constant 0 : index
    %22 = arith.index_cast %21 : i32 to index
    %c0_14 = arith.constant 0 : index
    %c0_15 = arith.constant 0 : index
    %23 = vector.load %arg2[%c0_13, %22, %c0_14, %c0_15] : memref<1x33x33x12xbf16, #tpu.memory_space<vmem>>, vector<1x8x32x12xbf16>
    %24 = vector.shape_cast %23 : vector<1x8x32x12xbf16> to vector<8x32x12xbf16>
    %25 = vector.shape_cast %24 : vector<8x32x12xbf16> to vector<256x12xbf16>
    %c2 = arith.constant 2 : index
    %c0_16 = arith.constant 0 : index
    %c0_17 = arith.constant 0 : index
    %26 = vector.load %arg3[%c2, %c0_16, %c0_17] : memref<4x12x16xbf16, #tpu.memory_space<vmem>>, vector<1x12x16xbf16>
    %27 = vector.shape_cast %26 : vector<1x12x16xbf16> to vector<12x16xbf16>
    %cst_18 = arith.constant dense<0.000000e+00> : vector<256x16xf32>
    %28 = tpu.matmul %25, %27, %cst_18 {dimension_numbers = #tpu.dot_dimension_numbers<[1], [0], [0], [1], [0, 0, 1, 1], [], []>} : vector<256x12xbf16>, vector<12x16xbf16>, vector<256x16xf32> -> vector<256x16xf32>
    %29 = arith.addf %20, %28 : vector<256x16xf32>
    %c1_i32_19 = arith.constant 1 : i32
    %30 = arith.addi %1, %c1_i32_19 : i32
    %c0_20 = arith.constant 0 : index
    %31 = arith.index_cast %30 : i32 to index
    %c1_21 = arith.constant 1 : index
    %c0_22 = arith.constant 0 : index
    %32 = vector.load %arg2[%c0_20, %31, %c1_21, %c0_22] : memref<1x33x33x12xbf16, #tpu.memory_space<vmem>>, vector<1x8x32x12xbf16>
    %33 = vector.shape_cast %32 : vector<1x8x32x12xbf16> to vector<8x32x12xbf16>
    %34 = vector.shape_cast %33 : vector<8x32x12xbf16> to vector<256x12xbf16>
    %c3 = arith.constant 3 : index
    %c0_23 = arith.constant 0 : index
    %c0_24 = arith.constant 0 : index
    %35 = vector.load %arg3[%c3, %c0_23, %c0_24] : memref<4x12x16xbf16, #tpu.memory_space<vmem>>, vector<1x12x16xbf16>
    %36 = vector.shape_cast %35 : vector<1x12x16xbf16> to vector<12x16xbf16>
    %cst_25 = arith.constant dense<0.000000e+00> : vector<256x16xf32>
    %37 = tpu.matmul %34, %36, %cst_25 {dimension_numbers = #tpu.dot_dimension_numbers<[1], [0], [0], [1], [0, 0, 1, 1], [], []>} : vector<256x12xbf16>, vector<12x16xbf16>, vector<256x16xf32> -> vector<256x16xf32>
    %38 = arith.addf %29, %37 : vector<256x16xf32>
    %c0_26 = arith.constant 0 : index
    %c0_27 = arith.constant 0 : index
    %39 = vector.load %arg4[%c0_26, %c0_27] : memref<1x16xf32, #tpu.memory_space<vmem>>, vector<1x16xf32>
    %40 = vector.broadcast %39 : vector<1x16xf32> to vector<256x16xf32>
    %41 = arith.addf %38, %40 : vector<256x16xf32>
    %cst_28 = arith.constant 0.000000e+00 : f32
    %42 = vector.broadcast %cst_28 : f32 to vector<256x16xf32>
    %43 = arith.maximumf %41, %42 : vector<256x16xf32>
    %44 = arith.truncf %43 : vector<256x16xf32> to vector<256x16xbf16>
    %c0_29 = arith.constant 0 : index
    %c0_30 = arith.constant 0 : index
    %c0_31 = arith.constant 0 : index
    %45 = vector.load %arg5[%c0_29, %c0_30, %c0_31] : memref<1x256x16xbf16, #tpu.memory_space<vmem>>, vector<1x256x16xbf16>
    %46 = vector.shape_cast %45 : vector<1x256x16xbf16> to vector<256x16xbf16>
    %47 = vector.shape_cast %44 : vector<256x16xbf16> to vector<1x256x16xbf16>
    tpu.vector_store %arg5[%c0_29, %c0_30, %c0_31], %47 {strides = array<i32>} : memref<1x256x16xbf16, #tpu.memory_space<vmem>>, vector<1x256x16xbf16>,
    return
  }
  func.func @transform_0(%arg0: i32, %arg1: i32) -> (i32, i32, i32, i32) {
    %c0_i32 = arith.constant 0 : i32
    %c0_i32_0 = arith.constant 0 : i32
    %c0_i32_1 = arith.constant 0 : i32
    %c0_i32_2 = arith.constant 0 : i32
    return %arg0, %c0_i32, %c0_i32_0, %c0_i32_1 : i32, i32, i32, i32
  }
  func.func @transform_1(%arg0: i32, %arg1: i32) -> (i32, i32, i32) {
    %c0_i32 = arith.constant 0 : i32
    %c0_i32_0 = arith.constant 0 : i32
    %c0_i32_1 = arith.constant 0 : i32
    %c0_i32_2 = arith.constant 0 : i32
    return %c0_i32, %c0_i32_0, %c0_i32_1 : i32, i32, i32
  }
  func.func @transform_2(%arg0: i32, %arg1: i32) -> (i32, i32) {
    %c0_i32 = arith.constant 0 : i32
    %c0_i32_0 = arith.constant 0 : i32
    %c0_i32_1 = arith.constant 0 : i32
    return %c0_i32, %c0_i32_0 : i32, i32
  }
  func.func @transform_3(%arg0: i32, %arg1: i32) -> (i32, i32, i32) {
    %c0_i32 = arith.constant 0 : i32
    %c0_i32_0 = arith.constant 0 : i32
    return %arg0, %arg1, %c0_i32 : i32, i32, i32
  }
}

</mosaic_0001>

<bundles_post_ra>
// kernel: tpu_custom_call.1
= control target key start
LH: loop header
LB: loop body
LE: loop exit
PB: predicated region body
PF: predicated region fallthrough
CT: control target
= control target key end

     0   :  { %s2600_s12 = smov 0   ;;  %s2602_s13 = smov 0   ;;  %s3195_s0 = inlined_call_operand.vmem [shape: bf16[2,33,33,12], index: 0, kind: input, shape index: {}]   ;;  %s3196_s1 = inlined_call_operand.vmem [shape: bf16[4,12,16], index: 1, kind: input, shape index: {}]   ;;  %s3197_s2 = inlined_call_operand.vmem [shape: f32[1,16], index: 2, kind: input, shape index: {}]   ;;  %s3198_s3 = inlined_call_operand.vmem [shape: bf16[2,1024,16], index: 3, kind: output, shape index: {}]  }
   0x1   :  { %s2604_s14 = smov 0   ;;  %s2606_s15 = smov 0  }
   0x2   :  { %s2608_s16 = smov 0  }
   0x3 LB: > { %s22_s17 = sadd.s32 1, %s2570_s14  ;;  %s25_s18 = sadd.s32 1, %s2574_s15  ;;  %s2578_s16 = sphi %s2608_s16, %s13_s16   ;;  %s2574_s15 = sphi %s2606_s15, %s3204_s15   ;;  %s2570_s14 = sphi %s2604_s14, %s3203_s14   ;;  %s2566_s13 = sphi %s2602_s13, %s3202_s13   ;;  %s2562_s12 = sphi %s2600_s12, %s3201_s12  }
   0x4   : > { %p23_p0 = scmp.ge.s32.totalorder %s22_s17, 4  ;;  %p2162_p1 = scmp.ge.s32.totalorder %s2578_s16, 1 }
   0x5   : > { %p151_p2 = scmp.lt.s32.totalorder %s2578_s16, 9 }
   0x6   : > { %s3206_s17 = smov (%p23_p0, %s22_s17), 0  ;;  %s3208_s18 = smov (!%p23_p0, %s25_s18), %s2574_s15 }
   0x7   : > { %p152_p3 = pnand %p2162_p1, %p151_p2  ;;  %p27_p4 = scmp.ge.s32.totalorder %s3208_s18, 2 }
   0x8   : > { %p179_p5 = scmp.lt.s32.totalorder (!%p152_p3), %s2566_s13, 1  ;;  %s2460_s4 = smul.u32 (!%p152_p3), 160, %s2562_s12 }
   0x9   : > { %s3210_s18 = smov (%p27_p4, %s3208_s18), 0  ;;  %155 = sbr.rel (%p152_p3) target bundleno = 428 (0x1ac), region = 32 }
   0xa   : > { %s2164_s21 = sshll.u32 (!%p152_p3), %s2562_s12, 5 }
   0xb   : > { %p187_p6 = scmp.lt.s32.totalorder (!%p152_p3), %s2164_s21, 127 }
   0xe   : > { %vm701_vm0 = vcmask 1045504   ;;  %v2378_v0 = vld [vmem:[%s3196_s1 + $0x10] sm:$0xf]  ;;  %v2495_v1 = vld [vmem:[%s3196_s1 + $0x10] sm:$0x30]  ;;  %s3212_s13 = smov (!%p179_p5, %s2566_s13), 1 }
   0xf   : > { %v2379_v2 = vor.u32 %v2495_v1, %v2378_v0  ;;  %v2258_v3 = vld [vmem:[%s3196_s1] sm:$0xf]  ;;  %v2477_v4 = vld [vmem:[%s3196_s1] sm:$0x30]  ;;  %v2174_v6 = vld [vmem:[%s3196_s1 + $0x8] sm:$0xf] }
  0x10   : > { %v2259_v5 = vor.u32 %v2477_v4, %v2258_v3  ;;  %v2478_v7 = vld [vmem:[%s3196_s1 + $0x8] sm:$0x30]  ;;  %v2440_v10 = vld [vmem:[%s3196_s1 + $0x18] sm:$0xf]  ;;  %v2496_v11 = vld [vmem:[%s3196_s1 + $0x18] sm:$0x30] }
  0x11   : > { %v1192_v8 = vsel %vm701_vm0, %v2379_v2, 0  ;;  %v2175_v9 = vor.u32 %v2478_v7, %v2174_v6  ;;  %s2497_s9 = smul.u32 660, %s3212_s13  ;;  %v2441_v13 = vor.u32 %v2496_v11, %v2440_v10  ;;  %vm652_vm1 = vcmask 97280   ;;  %s3214_s21 = smov (!%p187_p6, %s2164_s21), 127 }
  0x12   : > { %1201 = vmatpush.bf16.msra.mxu2 %v1192_v8  ;;  %v928_v12 = vsel %vm701_vm0, %v2259_v5, 0  ;;  %vm241_vm2 = vsmask.f32 3328  ;;  %vm242_vm3 = vsmask.f32 7440  ;;  %s2165_s12 = sshll.u32 %s3212_s13, 7 }
  0x13   : > { %937 = vmatpush.bf16.msra.mxu1 %v928_v12  ;;  %v703_v14 = vsel %vm701_vm0, %v2175_v9, 0  ;;  %s183_s19 = scalar_lea.vmem %s3195_s0, %s2497_s9  ;;  %v1812_v15 = vsel %vm701_vm0, %v2441_v13, 0  ;;  %vm2682_vm4 = vmor %vm241_vm2, %vm242_vm3  ;;  %s190_s13 = sadd.s32 %s2165_s12, %s3214_s21  ;;  %vm2035_vm5 = vcmask 125952  }
  0x14   : > { %712 = vmatpush.bf16.msra.mxu0 %v703_v14  ;;  %s2667_s20 = scalar_lea.vmem %s183_s19, %s2460_s4  ;;  %1821 = vmatpush.bf16.msra.mxu3 %v1812_v15  ;;  %s2166_s24 = sshll.u32 %s190_s13, 2 }
  0x15   : > { %v2479_v16 = vld [vmem:[%s2667_s20 + $0x14] sm:$0xff]  ;;  %v2461_v17 = vld [vmem:[%s2667_s20] sm:$0xff]  ;;  %v201_v20 = vld [vmem:[%s2667_s20 + $0x8] sm:$0xf]  ;;  %s2894_s27 = scalar_lea.vmem %s3198_s3, %s2166_s24 }
  0x16   : > { %v199_v18 = vld [vmem:[%s2667_s20] sm:$0xf]  ;;  %v200_v19 = vld [vmem:[%s2667_s20 + $0x4] sm:$0xf]  ;;  %2380 = vmatmul.msk.bf16.vlgmr.msra.gmra.mxu2 %vm652_vm1, %v2479_v16  ;;  %2260 = vmatmul.msk.bf16.vlgmr.msra.gmra.mxu1 %vm652_vm1, %v2461_v17  ;;  %v264_v25 = vshll.u32 %v201_v20, 16  ;;  %v268_v26 = vshrl.u32 %v201_v20, 16 }
  0x17   : > { %v245_v21 = vshrl.u32 %v199_v18, 16  ;;  %v248_v22 = vshll.u32 %v199_v18, 16  ;;  %v254_v23 = vshll.u32 %v200_v19, 16  ;;  %v258_v24 = vshrl.u32 %v200_v19, 16  ;;  %v2396_v27 = vld [vmem:[%s2667_s20 + $0x14] sm:$0xf] }
  0x18   : > { %v2397_v30 = vld [vmem:[%s2667_s20 + $0x18] sm:$0xf]  ;;  %v2398_v31 = vld [vmem:[%s2667_s20 + $0x1c] sm:$0xf]  ;;  %v266_v34 = vrot.slane %v264_v25, 5  ;;  %v1356_v35 = vshrl.u32 %v2396_v27, 16 }
  0x19   : > { %v247_v28 = vrot.slane %v245_v21, 4  ;;  %v250_v29 = vrot.slane %v248_v22, 5  ;;  %v256_v32 = vrot.slane %v254_v23, 5  ;;  %v260_v33 = vrot.slane %v258_v24, 4  ;;  %v202_v40 = vld [vmem:[%s2667_s20 + $0xc] sm:$0xf] }
  0x1a   : > { %v1359_v37 = vshll.u32 %v2396_v27, 16  ;;  %v1365_v38 = vshll.u32 %v2397_v30, 16  ;;  %v1369_v39 = vshrl.u32 %v2397_v30, 16  ;;  %v1358_v43 = vrot.slane %v1356_v35, 4  ;;  %v233_v57 = vld [vmem:[%s2667_s20 + $0x10] sm:$0x1] }
  0x1b   : > { %v251_v36 = vor.u32 %v250_v29, %v247_v28  ;;  %v261_v42 = vor.u32 %v260_v33, %v256_v32  ;;  %v1375_v44 = vshll.u32 %v2398_v31, 16  ;;  %v1379_v45 = vshrl.u32 %v2398_v31, 16  ;;  %v2399_v59 = vld [vmem:[%s2667_s20 + $0x20] sm:$0xf]  ;;  %v2400_v12 = vld [vmem:[%s2667_s20 + $0x24] sm:$0x1] }
  0x1c   : > { %v1361_v47 = vrot.slane %v1359_v37, 5  ;;  %v1367_v48 = vrot.slane %v1365_v38, 5  ;;  %v1371_v49 = vrot.slane %v1369_v39, 4  ;;  %v270_v52 = vrot.slane %v268_v26, 4  ;;  %v2480_v15 = vld [vmem:[%s2667_s20 + $0x1c] sm:$0xff]  ;;  %v2462_v18 = vld [vmem:[%s2667_s20 + $0x8] sm:$0xff] }
  0x1d   : > { %v252_v46 = vrot.slane %v251_v36, 4  ;;  %v262_v50 = vrot.slane %v261_v42, 4  ;;  %v1377_v51 = vrot.slane %v1375_v44, 5  ;;  %v274_v53 = vshll.u32 %v202_v40, 16  ;;  %v203_v17 = vld [vmem:[%s2667_s20 + $0x14] sm:$0xf] }
  0x1e   : > { %v1362_v55 = vor.u32 %v1361_v47, %v1358_v43  ;;  %v1372_v56 = vor.u32 %v1371_v49, %v1367_v48  ;;  %v278_v58 = vshrl.u32 %v202_v40, 16  ;;  %v271_v62 = vor.u32 %v270_v52, %v266_v34  ;;  %v204_v21 = vld [vmem:[%s2667_s20 + $0x18] sm:$0xf]  ;;  %v2401_v36 = vld [vmem:[%s2667_s20 + $0x28] sm:$0xf] }
  0x1f   : > { %v257_v54 = vsel %vm2682_vm4, %v252_v46, %v256_v32  ;;  %v267_v60 = vsel %vm2682_vm4, %v262_v50, %v266_v34  ;;  %v276_v63 = vrot.slane %v274_v53, 5  ;;  %v284_v5 = vshll.u32 %v233_v57, 16  ;;  %v2402_v37 = vld [vmem:[%s2667_s20 + $0x2c] sm:$0xf]  ;;  %v205_v47 = vld [vmem:[%s2667_s20 + $0x1c] sm:$0xf] }
  0x20   : > { %v599_v61 = vunpack.c.l.b16 %v257_v54  ;;  %v600_v0 = vunpack.c.l.b16 %v267_v60  ;;  %v1363_v1 = vrot.slane %v1362_v55, 4  ;;  %v1373_v2 = vrot.slane %v1372_v56, 4 }
  0x21   : > { %v280_v3 = vrot.slane %v278_v58, 4  ;;  %v272_v4 = vrot.slane %v271_v62, 4  ;;  %v1381_v6 = vrot.slane %v1379_v45, 4  ;;  %v1385_v7 = vshll.u32 %v2399_v59, 16 }
  0x22   : > { %v631_v8 = vpack.c.b16 %v600_v0, %v599_v61  ;;  %v1368_v9 = vsel %vm2682_vm4, %v1363_v1, %v1367_v48  ;;  %v1378_v10 = vsel %vm2682_vm4, %v1373_v2, %v1377_v51  ;;  %v286_v16 = vrot.slane %v284_v5, 5  ;;  %v2481_v1 = vld [vmem:[%s2667_s20 + $0x28] sm:$0xff] }
  0x23   : > { %v281_v11 = vor.u32 %v280_v3, %v276_v63  ;;  %v1710_v13 = vunpack.c.l.b16 %v1368_v9  ;;  %v1711_v14 = vunpack.c.l.b16 %v1378_v10  ;;  %v1382_v20 = vor.u32 %v1381_v6, %v1377_v51  ;;  %v206_v9 = vld [vmem:[%s2667_s20 + $0x20] sm:$0xf] }
  0x24   : > { %2176 = vmatmul.msk.bf16.vlgmr.msra.gmra.mxu0 %vm652_vm1, %v631_v8  ;;  %v1387_v23 = vrot.slane %v1385_v7, 5  ;;  %v1389_v24 = vshrl.u32 %v2399_v59, 16  ;;  %v1395_v25 = vshll.u32 %v2400_v12, 16  ;;  %v277_v26 = vsel %vm2682_vm4, %v272_v4, %v276_v63  ;;  %v2403_v63 = vld [vmem:[%s2667_s20 + $0x30] sm:$0xf]  ;;  %v2463_v4 = vld [vmem:[%s2667_s20 + $0x14] sm:$0xff] }
  0x25   : > { %v282_v19 = vrot.slane %v281_v11, 4  ;;  %v1742_v22 = vpack.c.b16 %v1711_v14, %v1710_v13  ;;  %v1383_v27 = vrot.slane %v1382_v20, 4  ;;  %v289_v28 = vshrl.u32 %v203_v17, 16 }
  0x26   : > { %2381 = vmatmul.msk.bf16.gmra.mxu2 %vm652_vm1, %v2480_v15  ;;  %v1391_v30 = vrot.slane %v1389_v24, 4  ;;  %v292_v31 = vshll.u32 %v203_v17, 16  ;;  %v298_v32 = vshll.u32 %v204_v21, 16  ;;  %2261 = vmatmul.msk.bf16.gmra.mxu1 %vm652_vm1, %v2462_v18  ;;  %v302_v33 = vshrl.u32 %v204_v21, 16  ;;  %v2404_v18 = vld [vmem:[%s2667_s20 + $0x34] sm:$0xf] }
  0x27   : > { %2442 = vmatmul.msk.bf16.vlgmr.msra.gmra.mxu3 %vm652_vm1, %v1742_v22  ;;  %v287_v29 = vsel %vm2682_vm4, %v282_v19, %v286_v16  ;;  %v1397_v35 = vrot.slane %v1395_v25, 5  ;;  %v601_v38 = vunpack.c.l.b16 %v277_v26  ;;  %v1388_v40 = vsel %vm2682_vm4, %v1383_v27, %v1387_v23  ;;  %v234_v27 = vld [vmem:[%s2667_s20 + $0x24] sm:$0x1] }
  0x28   : > { %v1392_v34 = vor.u32 %v1391_v30, %v1387_v23  ;;  %v602_v39 = vunpack.c.l.b16 %v287_v29  ;;  %v291_v42 = vrot.slane %v289_v28, 4  ;;  %v294_v44 = vrot.slane %v292_v31, 5 }
  0x29   : > { %v300_v45 = vrot.slane %v298_v32, 5  ;;  %v304_v46 = vrot.slane %v302_v33, 4  ;;  %v1400_v48 = vshrl.u32 %v2401_v36, 16  ;;  %v1403_v49 = vshll.u32 %v2401_v36, 16 }
  0x2a   : > { %v1393_v43 = vrot.slane %v1392_v34, 4  ;;  %v1409_v50 = vshll.u32 %v2402_v37, 16  ;;  %v1413_v51 = vshrl.u32 %v2402_v37, 16  ;;  %v632_v53 = vpack.c.b16 %v602_v39, %v601_v38  ;;  %v2405_v39 = vld [vmem:[%s2667_s20 + $0x38] sm:$0x1] }
  0x2b   : > { %v1712_v54 = vunpack.c.l.b16 %v1388_v40  ;;  %v295_v56 = vor.u32 %v294_v44, %v291_v42  ;;  %v305_v57 = vor.u32 %v304_v46, %v300_v45  ;;  %v308_v58 = vshll.u32 %v205_v47, 16  ;;  %v2482_v44 = vld [vmem:[%s2667_s20 + $0x30] sm:$0xff] }
  0x2c   : > { %v1398_v52 = vsel %vm2682_vm4, %v1393_v43, %v1397_v35  ;;  %v1402_v59 = vrot.slane %v1400_v48, 4  ;;  %v1405_v60 = vrot.slane %v1403_v49, 5  ;;  %v1411_v61 = vrot.slane %v1409_v50, 5  ;;  %v2464_v48 = vld [vmem:[%s2667_s20 + $0x1c] sm:$0xff] }
  0x2d   : > { %v1713_v55 = vunpack.c.l.b16 %v1398_v52  ;;  %v1415_v62 = vrot.slane %v1413_v51, 4  ;;  %v296_v2 = vrot.slane %v295_v56, 4  ;;  %v310_v3 = vrot.slane %v308_v58, 5  ;;  %v208_v51 = vld [vmem:[%s2667_s20 + $0x2c] sm:$0xf] }
  0x2e   : > { %v306_v5 = vrot.slane %v305_v57, 4  ;;  %v1406_v6 = vor.u32 %v1405_v60, %v1402_v59  ;;  %v1419_v8 = vshll.u32 %v2403_v63, 16  ;;  %v312_v10 = vshrl.u32 %v205_v47, 16  ;;  %v207_v47 = vld [vmem:[%s2667_s20 + $0x28] sm:$0xf] }
  0x2f   : > { %v1743_v0 = vpack.c.b16 %v1713_v55, %v1712_v54  ;;  %v1416_v7 = vor.u32 %v1415_v62, %v1411_v61  ;;  %v301_v11 = vsel %vm2682_vm4, %v296_v2, %v300_v45  ;;  %v318_v12 = vshll.u32 %v206_v9, 16  ;;  %v2407_v62 = vld [vmem:[%s2667_s20 + $0x40] sm:$0xf] }
  0x30   : > { %v322_v13 = vshrl.u32 %v206_v9, 16  ;;  %v311_v14 = vsel %vm2682_vm4, %v306_v5, %v310_v3  ;;  %v1407_v15 = vrot.slane %v1406_v6, 4  ;;  %v1421_v17 = vrot.slane %v1419_v8, 5  ;;  %v209_v8 = vld [vmem:[%s2667_s20 + $0x30] sm:$0xf] }
  0x31   : > { %v1417_v16 = vrot.slane %v1416_v7, 4  ;;  %v1423_v19 = vshrl.u32 %v2403_v63, 16  ;;  %v314_v20 = vrot.slane %v312_v10, 4  ;;  %v603_v21 = vunpack.c.l.b16 %v301_v11 }
  0x32   : > { %v604_v22 = vunpack.c.l.b16 %v311_v14  ;;  %v320_v23 = vrot.slane %v318_v12, 5  ;;  %v324_v24 = vrot.slane %v322_v13, 4  ;;  %v1412_v25 = vsel %vm2682_vm4, %v1407_v15, %v1411_v61  ;;  %v2406_v61 = vld [vmem:[%s2667_s20 + $0x3c] sm:$0xf] }
  0x33   : > { %v1422_v26 = vsel %vm2682_vm4, %v1417_v16, %v1421_v17  ;;  %v1429_v28 = vshll.u32 %v2404_v18, 16  ;;  %v1433_v29 = vshrl.u32 %v2404_v18, 16  ;;  %v315_v30 = vor.u32 %v314_v20, %v310_v3  ;;  %v2408_v18 = vld [vmem:[%s2667_s20 + $0x44] sm:$0xf] }
  0x34   : > { %2177 = vmatmul.msk.bf16.gmra.mxu0 %vm652_vm1, %v632_v53  ;;  %v1425_v31 = vrot.slane %v1423_v19, 4  ;;  %v1714_v32 = vunpack.c.l.b16 %v1412_v25  ;;  %v1715_v33 = vunpack.c.l.b16 %v1422_v26  ;;  %v325_v34 = vor.u32 %v324_v24, %v320_v23  ;;  %v2483_v24 = vld [vmem:[%s2667_s20 + $0x3c] sm:$0xff] }
  0x35   : > { %v328_v35 = vshll.u32 %v234_v27, 16  ;;  %v633_v36 = vpack.c.b16 %v604_v22, %v603_v21  ;;  %v1431_v37 = vrot.slane %v1429_v28, 5  ;;  %v1435_v38 = vrot.slane %v1433_v29, 4  ;;  %v2465_v27 = vld [vmem:[%s2667_s20 + $0x28] sm:$0xff] }
  0x36   : > { %2382 = vmatmul.msk.bf16.gmra.mxu2 %vm652_vm1, %v2481_v1  ;;  %2262 = vmatmul.msk.bf16.gmra.mxu1 %vm652_vm1, %v2463_v4  ;;  %v316_v40 = vrot.slane %v315_v30, 4  ;;  %v1426_v42 = vor.u32 %v1425_v31, %v1421_v17  ;;  %v1744_v43 = vpack.c.b16 %v1715_v33, %v1714_v32  ;;  %v326_v45 = vrot.slane %v325_v34, 4  ;;  %v210_v32 = vld [vmem:[%s2667_s20 + $0x34] sm:$0xf]  ;;  %v2409_v33 = vld [vmem:[%s2667_s20 + $0x48] sm:$0xf] }
  0x37   : > { %2443 = vmatmul.msk.bf16.gmra.mxu3 %vm652_vm1, %v1743_v0  ;;  %v330_v46 = vrot.slane %v328_v35, 5  ;;  %v1436_v49 = vor.u32 %v1435_v38, %v1431_v37  ;;  %v1439_v50 = vshll.u32 %v2405_v39, 16  ;;  %v333_v54 = vshrl.u32 %v207_v47, 16 }
  0x38   : > { %v321_v52 = vsel %vm2682_vm4, %v316_v40, %v320_v23  ;;  %v1427_v53 = vrot.slane %v1426_v42, 4  ;;  %v336_v56 = vshll.u32 %v207_v47, 16  ;;  %v342_v57 = vshll.u32 %v208_v51, 16 }
  0x39   : > { %v331_v55 = vsel %vm2682_vm4, %v326_v45, %v330_v46  ;;  %v346_v58 = vshrl.u32 %v208_v51, 16  ;;  %v1437_v59 = vrot.slane %v1436_v49, 4  ;;  %v1441_v60 = vrot.slane %v1439_v50, 5 }
  0x3a   : > { %v605_v63 = vunpack.c.l.b16 %v321_v52  ;;  %v606_v0 = vunpack.c.l.b16 %v331_v55  ;;  %v1432_v1 = vsel %vm2682_vm4, %v1427_v53, %v1431_v37  ;;  %v335_v2 = vrot.slane %v333_v54, 4  ;;  %v235_v52 = vld [vmem:[%s2667_s20 + $0x38] sm:$0x1] }
  0x3b   : > { %v338_v3 = vrot.slane %v336_v56, 5  ;;  %v344_v4 = vrot.slane %v342_v57, 5  ;;  %v348_v5 = vrot.slane %v346_v58, 4  ;;  %v1444_v6 = vshrl.u32 %v2406_v61, 16  ;;  %v2410_v57 = vld [vmem:[%s2667_s20 + $0x4c] sm:$0x1] }
  0x3c   : > { %v1442_v7 = vsel %vm2682_vm4, %v1437_v59, %v1441_v60  ;;  %v1447_v9 = vshll.u32 %v2406_v61, 16  ;;  %v1453_v10 = vshll.u32 %v2407_v62, 16  ;;  %v1457_v11 = vshrl.u32 %v2407_v62, 16 }
  0x3d   : > { %v634_v12 = vpack.c.b16 %v606_v0, %v605_v63  ;;  %v1716_v13 = vunpack.c.l.b16 %v1432_v1  ;;  %v1717_v14 = vunpack.c.l.b16 %v1442_v7  ;;  %v339_v15 = vor.u32 %v338_v3, %v335_v2 }
  0x3e   : > { %v349_v16 = vor.u32 %v348_v5, %v344_v4  ;;  %v352_v17 = vshll.u32 %v209_v8, 16  ;;  %v1446_v19 = vrot.slane %v1444_v6, 4  ;;  %v1449_v20 = vrot.slane %v1447_v9, 5  ;;  %v211_v5 = vld [vmem:[%s2667_s20 + $0x3c] sm:$0xf]  ;;  %v2466_v6 = vld [vmem:[%s2667_s20 + $0x30] sm:$0xff] }
  0x3f   : > { %v1455_v21 = vrot.slane %v1453_v10, 5  ;;  %v1459_v22 = vrot.slane %v1457_v11, 4  ;;  %v1745_v23 = vpack.c.b16 %v1717_v14, %v1716_v13  ;;  %v340_v25 = vrot.slane %v339_v15, 4  ;;  %v212_v9 = vld [vmem:[%s2667_s20 + $0x40] sm:$0xf] }
  0x40   : > { %v1463_v26 = vshll.u32 %v2408_v18, 16  ;;  %v350_v28 = vrot.slane %v349_v16, 4  ;;  %v354_v29 = vrot.slane %v352_v17, 5  ;;  %v1450_v30 = vor.u32 %v1449_v20, %v1446_v19  ;;  %v2412_v19 = vld [vmem:[%s2667_s20 + $0x54] sm:$0xf] }
  0x41   : > { %v1460_v31 = vor.u32 %v1459_v22, %v1455_v21  ;;  %v345_v34 = vsel %vm2682_vm4, %v340_v25, %v344_v4  ;;  %v356_v35 = vshrl.u32 %v209_v8, 16  ;;  %v362_v40 = vshll.u32 %v210_v32, 16  ;;  %v2484_v4 = vld [vmem:[%s2667_s20 + $0x44] sm:$0xff] }
  0x42   : > { %v355_v37 = vsel %vm2682_vm4, %v350_v28, %v354_v29  ;;  %v1451_v38 = vrot.slane %v1450_v30, 4  ;;  %v1467_v42 = vshrl.u32 %v2408_v18, 16  ;;  %v1477_v45 = vshrl.u32 %v2409_v33, 16  ;;  %v2411_v18 = vld [vmem:[%s2667_s20 + $0x50] sm:$0xf] }
  0x43   : > { %v1461_v39 = vrot.slane %v1460_v31, 4  ;;  %v607_v46 = vunpack.c.l.b16 %v345_v34  ;;  %v608_v47 = vunpack.c.l.b16 %v355_v37  ;;  %v358_v50 = vrot.slane %v356_v35, 4  ;;  %v213_v28 = vld [vmem:[%s2667_s20 + $0x44] sm:$0xf] }
  0x44   : > { %2178 = vmatmul.msk.bf16.gmra.mxu0 %vm652_vm1, %v633_v36  ;;  %v1465_v36 = vrot.slane %v1463_v26, 5  ;;  %v364_v51 = vrot.slane %v362_v40, 5  ;;  %v1469_v54 = vrot.slane %v1467_v42, 4  ;;  %v1479_v56 = vrot.slane %v1477_v45, 4 }
  0x45   : > { %v635_v60 = vpack.c.b16 %v608_v47, %v607_v46  ;;  %v359_v61 = vor.u32 %v358_v50, %v354_v29  ;;  %v372_v62 = vshll.u32 %v235_v52, 16  ;;  %v1483_v2 = vshll.u32 %v2410_v57, 16  ;;  %v2413_v46 = vld [vmem:[%s2667_s20 + $0x58] sm:$0xf]  ;;  %v2485_v50 = vld [vmem:[%s2667_s20 + $0x50] sm:$0xff] }
  0x46   : > { %2383 = vmatmul.msk.bf16.gmra.mxu2 %vm652_vm1, %v2482_v44  ;;  %2263 = vmatmul.msk.bf16.gmra.mxu1 %vm652_vm1, %v2464_v48  ;;  %v1473_v44 = vshll.u32 %v2409_v33, 16  ;;  %v1456_v48 = vsel %vm2682_vm4, %v1451_v38, %v1455_v21  ;;  %v1466_v49 = vsel %vm2682_vm4, %v1461_v39, %v1465_v36  ;;  %v1470_v0 = vor.u32 %v1469_v54, %v1465_v36 }
  0x47   : > { %2444 = vmatmul.msk.bf16.gmra.mxu3 %vm652_vm1, %v1744_v43  ;;  %v366_v43 = vshrl.u32 %v210_v32, 16  ;;  %v1718_v58 = vunpack.c.l.b16 %v1456_v48  ;;  %v1719_v59 = vunpack.c.l.b16 %v1466_v49  ;;  %v360_v7 = vrot.slane %v359_v61, 4 }
  0x48   : > { %v1475_v55 = vrot.slane %v1473_v44, 5  ;;  %v374_v8 = vrot.slane %v372_v62, 5  ;;  %v1471_v11 = vrot.slane %v1470_v0, 4  ;;  %v1485_v13 = vrot.slane %v1483_v2, 5 }
  0x49   : > { %v368_v53 = vrot.slane %v366_v43, 4  ;;  %v1746_v3 = vpack.c.b16 %v1719_v59, %v1718_v58  ;;  %v377_v14 = vshrl.u32 %v211_v5, 16  ;;  %v380_v15 = vshll.u32 %v211_v5, 16 }
  0x4a   : > { %v1480_v1 = vor.u32 %v1479_v56, %v1475_v55  ;;  %v386_v16 = vshll.u32 %v212_v9, 16  ;;  %v390_v17 = vshrl.u32 %v212_v9, 16  ;;  %v365_v20 = vsel %vm2682_vm4, %v360_v7, %v364_v51  ;;  %v214_v56 = vld [vmem:[%s2667_s20 + $0x48] sm:$0xf] }
  0x4b   : > { %v369_v63 = vor.u32 %v368_v53, %v364_v51  ;;  %v1476_v22 = vsel %vm2682_vm4, %v1471_v11, %v1475_v55  ;;  %v382_v25 = vrot.slane %v380_v15, 5  ;;  %v1488_v26 = vshrl.u32 %v2411_v18, 16  ;;  %v2467_v55 = vld [vmem:[%s2667_s20 + $0x3c] sm:$0xff] }
  0x4c   : > { %v388_v29 = vrot.slane %v386_v16, 5  ;;  %v392_v30 = vrot.slane %v390_v17, 4  ;;  %v1497_v31 = vshll.u32 %v2412_v19, 16  ;;  %v1501_v32 = vshrl.u32 %v2412_v19, 16 }
  0x4d   : > { %v370_v10 = vrot.slane %v369_v63, 4  ;;  %v609_v33 = vunpack.c.l.b16 %v365_v20  ;;  %v1720_v35 = vunpack.c.l.b16 %v1476_v22  ;;  %v396_v37 = vshll.u32 %v213_v28, 16  ;;  %v2415_v22 = vld [vmem:[%s2667_s20 + $0x60] sm:$0x1] }
  0x4e   : > { %v1490_v38 = vrot.slane %v1488_v26, 4  ;;  %v393_v42 = vor.u32 %v392_v30, %v388_v29  ;;  %v1499_v43 = vrot.slane %v1497_v31, 5  ;;  %v1503_v44 = vrot.slane %v1501_v32, 4  ;;  %v215_v32 = vld [vmem:[%s2667_s20 + $0x50] sm:$0xf] }
  0x4f   : > { %v375_v21 = vsel %vm2682_vm4, %v370_v10, %v374_v8  ;;  %v398_v48 = vrot.slane %v396_v37, 5  ;;  %v1507_v54 = vshll.u32 %v2413_v46, 16  ;;  %v400_v57 = vshrl.u32 %v213_v28, 16  ;;  %v236_v8 = vld [vmem:[%s2667_s20 + $0x4c] sm:$0x1] }
  0x50   : > { %v610_v34 = vunpack.c.l.b16 %v375_v21  ;;  %v394_v52 = vrot.slane %v393_v42, 4  ;;  %v1504_v53 = vor.u32 %v1503_v44, %v1499_v43  ;;  %v406_v63 = vshll.u32 %v214_v56, 16 }
  0x51   : > { %v1509_v62 = vrot.slane %v1507_v54, 5  ;;  %v410_v0 = vshrl.u32 %v214_v56, 16  ;;  %v402_v7 = vrot.slane %v400_v57, 4  ;;  %v416_v17 = vshll.u32 %v236_v8, 16 }
  0x52   : > { %v636_v45 = vpack.c.b16 %v610_v34, %v609_v33  ;;  %v1505_v61 = vrot.slane %v1504_v53, 4  ;;  %v408_v9 = vrot.slane %v406_v63, 5  ;;  %v1527_v31 = vshll.u32 %v2415_v22, 16  ;;  %v216_v33 = vld [vmem:[%s2667_s20 + $0x54] sm:$0xf] }
  0x53   : > { %v412_v10 = vrot.slane %v410_v0, 4  ;;  %v403_v16 = vor.u32 %v402_v7, %v398_v48  ;;  %v418_v26 = vrot.slane %v416_v17, 5  ;;  %v421_v42 = vshrl.u32 %v215_v32, 16  ;;  %v2418_v63 = vld [vmem:[%s2667_s20 + $0x6c] sm:$0xf] }
  0x54   : > { %2179 = vmatmul.msk.bf16.gmra.mxu0 %vm652_vm1, %v634_v12  ;;  %v1481_v12 = vrot.slane %v1480_v1, 4  ;;  %v2414_v1 = vld [vmem:[%s2667_s20 + $0x5c] sm:$0xf]  ;;  %v1510_v5 = vsel %vm2682_vm4, %v1505_v61, %v1509_v62  ;;  %v430_v44 = vshll.u32 %v216_v33, 16  ;;  %v1551_v7 = vshll.u32 %v2418_v63, 16 }
  0x55   : > { %v1517_v11 = vshll.u32 %v2414_v1, 16  ;;  %v1723_v15 = vunpack.c.l.b16 %v1510_v5  ;;  %v423_v54 = vrot.slane %v421_v42, 4 }
  0x56   : > { %2384 = vmatmul.msk.bf16.gmra.mxu2 %vm652_vm1, %v2483_v24  ;;  %2264 = vmatmul.msk.bf16.gmra.mxu1 %vm652_vm1, %v2465_v27  ;;  %v379_v24 = vrot.slane %v377_v14, 4  ;;  %v1491_v27 = vshll.u32 %v2411_v18, 16  ;;  %v413_v18 = vor.u32 %v412_v10, %v408_v9  ;;  %v432_v56 = vrot.slane %v430_v44, 5 }
  0x57   : > { %2445 = vmatmul.msk.bf16.gmra.mxu3 %vm652_vm1, %v1745_v23  ;;  %v1486_v23 = vsel %vm2682_vm4, %v1481_v12, %v1485_v13  ;;  %v1521_v12 = vshrl.u32 %v2414_v1, 16  ;;  %v1519_v20 = vrot.slane %v1517_v11, 5 }
  0x58   : > { %v1721_v36 = vunpack.c.l.b16 %v1486_v23  ;;  %v1493_v39 = vrot.slane %v1491_v27, 5  ;;  %v383_v40 = vor.u32 %v382_v25, %v379_v24  ;;  %v2486_v24 = vld [vmem:[%s2667_s20 + $0x58] sm:$0xff]  ;;  %v404_v25 = vrot.slane %v403_v16, 4  ;;  %v2468_v27 = vld [vmem:[%s2667_s20 + $0x44] sm:$0xff] }
  0x59   : > { %v1523_v21 = vrot.slane %v1521_v12, 4  ;;  %v414_v28 = vrot.slane %v413_v18, 4  ;;  %v2469_v12 = vld [vmem:[%s2667_s20 + $0x50] sm:$0xff]  ;;  %v1553_v18 = vrot.slane %v1551_v7, 5 }
  0x5a   : > { %v1747_v47 = vpack.c.b16 %v1721_v36, %v1720_v35  ;;  %v1494_v49 = vor.u32 %v1493_v39, %v1490_v38  ;;  %v384_v51 = vrot.slane %v383_v40, 4  ;;  %v409_v34 = vsel %vm2682_vm4, %v404_v25, %v408_v9  ;;  %v2416_v35 = vld [vmem:[%s2667_s20 + $0x64] sm:$0xf]  ;;  %v2417_v40 = vld [vmem:[%s2667_s20 + $0x68] sm:$0xf] }
  0x5b   : > { %v1524_v30 = vor.u32 %v1523_v21, %v1519_v20  ;;  %v419_v36 = vsel %vm2682_vm4, %v414_v28, %v418_v26  ;;  %v1529_v39 = vrot.slane %v1527_v31, 5  ;;  %v2487_v9 = vld [vmem:[%s2667_s20 + $0x64] sm:$0xff]  ;;  %v1555_v28 = vshrl.u32 %v2418_v63, 16 }
  0x5c   : > { %v1495_v58 = vrot.slane %v1494_v49, 4  ;;  %v389_v59 = vsel %vm2682_vm4, %v384_v51, %v388_v29  ;;  %v1545_v49 = vshrl.u32 %v2417_v40, 16  ;;  %v614_v51 = vunpack.c.l.b16 %v419_v36  ;;  %v219_v63 = vld [vmem:[%s2667_s20 + $0x64] sm:$0xf] }
  0x5d   : > { %v611_v2 = vunpack.c.l.b16 %v389_v59  ;;  %v1525_v38 = vrot.slane %v1524_v30, 4  ;;  %v1557_v42 = vrot.slane %v1555_v28, 4  ;;  %v465_v7 = vshrl.u32 %v219_v63, 16 }
  0x5e   : > { %v1547_v1 = vrot.slane %v1545_v49, 4 }
  0x5f   : > { %v1530_v53 = vsel %vm2682_vm4, %v1525_v38, %v1529_v39  ;;  %v237_v38 = vld [vmem:[%s2667_s20 + $0x60] sm:$0x1] }
  0x64   : > { %2180 = vmatmul.msk.bf16.gmra.mxu0 %vm652_vm1, %v635_v60  ;;  %v399_v60 = vsel %vm2682_vm4, %v394_v52, %v398_v48  ;;  %v1541_v48 = vshll.u32 %v2417_v40, 16 }
  0x66   : > { %2385 = vmatmul.msk.bf16.gmra.mxu2 %vm652_vm1, %v2484_v4  ;;  %2265 = vmatmul.msk.bf16.gmra.mxu1 %vm652_vm1, %v2466_v6  ;;  %v1500_v4 = vsel %vm2682_vm4, %v1495_v58, %v1499_v43  ;;  %v1511_v6 = vshrl.u32 %v2413_v46, 16  ;;  %v424_v43 = vshll.u32 %v215_v32, 16  ;;  %v1532_v46 = vshrl.u32 %v2416_v35, 16  ;;  %v217_v58 = vld [vmem:[%s2667_s20 + $0x58] sm:$0xf] }
  0x67   : > { %2446 = vmatmul.msk.bf16.gmra.mxu3 %vm652_vm1, %v1746_v3  ;;  %v612_v3 = vunpack.c.l.b16 %v399_v60  ;;  %v1722_v13 = vunpack.c.l.b16 %v1500_v4  ;;  %v1543_v0 = vrot.slane %v1541_v48, 5  ;;  %v440_v5 = vshll.u32 %v217_v58, 16  ;;  %v2420_v48 = vld [vmem:[%s2667_s20 + $0x74] sm:$0x1] }
  0x68   : > { %v1513_v19 = vrot.slane %v1511_v6, 4  ;;  %v1534_v59 = vrot.slane %v1532_v46, 4 }
  0x69   : > { %v637_v14 = vpack.c.b16 %v612_v3, %v611_v2  ;;  %v1748_v23 = vpack.c.b16 %v1723_v15, %v1722_v13  ;;  %v1548_v10 = vor.u32 %v1547_v1, %v1543_v0  ;;  %v218_v13 = vld [vmem:[%s2667_s20 + $0x5c] sm:$0xf]  ;;  %v442_v16 = vrot.slane %v440_v5, 5 }
  0x6a   : > { %v1514_v29 = vor.u32 %v1513_v19, %v1509_v62  ;;  %v1725_v62 = vunpack.c.l.b16 %v1530_v53  ;;  %v444_v19 = vshrl.u32 %v217_v58, 16  ;;  %v450_v21 = vshll.u32 %v218_v13, 16 }
  0x6b   : > { %v454_v22 = vshrl.u32 %v218_v13, 16  ;;  %v1558_v53 = vor.u32 %v1557_v42, %v1553_v18 }
  0x6c   : > { %v1515_v37 = vrot.slane %v1514_v29, 4  ;;  %v446_v32 = vrot.slane %v444_v19, 4 }
  0x6e   : > { %v1520_v52 = vsel %vm2682_vm4, %v1515_v37, %v1519_v20  ;;  %v1549_v20 = vrot.slane %v1548_v10, 4  ;;  %v2876_v10 = vld [vmem:[%s3197_s2] ss:$0 sm:$0xff] }
  0x6f   : > { %v1724_v61 = vunpack.c.l.b16 %v1520_v52 }
  0x70   : > { %v1554_v31 = vsel %vm2682_vm4, %v1549_v20, %v1553_v18 }
  0x71   : > { %v1749_v8 = vpack.c.b16 %v1725_v62, %v1724_v61  ;;  %v1727_v40 = vunpack.c.l.b16 %v1554_v31  ;;  %v2470_v61 = vld [vmem:[%s2667_s20 + $0x58] sm:$0xff] }
  0x74   : > { %2181 = vmatmul.msk.bf16.gmra.mxu0 %vm652_vm1, %v636_v45  ;;  %v434_v45 = vshrl.u32 %v216_v33, 16  ;;  %v452_v33 = vrot.slane %v450_v21, 5 }
  0x76   : > { %2386 = vmatmul.msk.bf16.gmra.mxu2 %vm652_vm1, %v2485_v50  ;;  %2266 = vmatmul.msk.bf16.gmra.mxu1 %vm652_vm1, %v2467_v55  ;;  %v613_v50 = vunpack.c.l.b16 %v409_v34  ;;  %v426_v55 = vrot.slane %v424_v43, 5  ;;  %v436_v57 = vrot.slane %v434_v45, 4  ;;  %v456_v34 = vrot.slane %v454_v22, 4 }
  0x77   : > { %2447 = vmatmul.msk.bf16.gmra.mxu3 %vm652_vm1, %v1747_v47  ;;  %v1535_v47 = vshll.u32 %v2416_v35, 16  ;;  %v447_v45 = vor.u32 %v446_v32, %v442_v16 }
  0x78   : > { %v638_v2 = vpack.c.b16 %v614_v51, %v613_v50  ;;  %v427_v3 = vor.u32 %v426_v55, %v423_v54  ;;  %v437_v4 = vor.u32 %v436_v57, %v432_v56  ;;  %v457_v46 = vor.u32 %v456_v34, %v452_v33  ;;  %v2488_v57 = vld [vmem:[%s2667_s20 + $0x6c] sm:$0xff] }
  0x79   : > { %v1537_v60 = vrot.slane %v1535_v47, 5  ;;  %v460_v47 = vshll.u32 %v237_v38, 16  ;;  %v1571_v55 = vshll.u32 %v2420_v48, 16  ;;  %v448_v58 = vrot.slane %v447_v45, 4  ;;  %v221_v34 = vld [vmem:[%s2667_s20 + $0x6c] sm:$0xf] }
  0x7a   : > { %v438_v15 = vrot.slane %v437_v4, 4  ;;  %v484_v48 = vshll.u32 %v221_v34, 16 }
  0x7b   : > { %v1538_v6 = vor.u32 %v1537_v60, %v1534_v59  ;;  %v458_v59 = vrot.slane %v457_v46, 4  ;;  %v462_v60 = vrot.slane %v460_v47, 5  ;;  %v453_v4 = vsel %vm2682_vm4, %v448_v58, %v452_v33 }
  0x7c   : > { %v443_v25 = vsel %vm2682_vm4, %v438_v15, %v442_v16 }
  0x7d   : > { %v1539_v17 = vrot.slane %v1538_v6, 4  ;;  %v616_v37 = vunpack.c.l.b16 %v443_v25  ;;  %v463_v5 = vsel %vm2682_vm4, %v458_v59, %v462_v60  ;;  %v1573_v6 = vrot.slane %v1571_v55, 5 }
  0x7e   : > { %v618_v18 = vunpack.c.l.b16 %v463_v5  ;;  %v2424_v5 = vld [vmem:[%s2667_s20 + $0x84] sm:$0xf] }
  0x84   : > { %2182 = vmatmul.msk.bf16.gmra.mxu0 %vm652_vm1, %v637_v14  ;;  %v428_v14 = vrot.slane %v427_v3, 4 }
  0x86   : > { %2387 = vmatmul.msk.bf16.gmra.mxu2 %vm652_vm1, %v2486_v24  ;;  %2267 = vmatmul.msk.bf16.gmra.mxu1 %vm652_vm1, %v2468_v27  ;;  %v433_v24 = vsel %vm2682_vm4, %v428_v14, %v432_v56  ;;  %v1544_v27 = vsel %vm2682_vm4, %v1539_v17, %v1543_v0  ;;  %v1559_v0 = vrot.slane %v1558_v53, 4  ;;  %v2422_v14 = vld [vmem:[%s2667_s20 + $0x7c] sm:$0xf]  ;;  %v617_v17 = vunpack.c.l.b16 %v453_v4 }
  0x87   : > { %2448 = vmatmul.msk.bf16.gmra.mxu3 %vm652_vm1, %v1748_v23  ;;  %v2419_v23 = vld [vmem:[%s2667_s20 + $0x70] sm:$0xf]  ;;  %v615_v36 = vunpack.c.l.b16 %v433_v24  ;;  %v1726_v39 = vunpack.c.l.b16 %v1544_v27  ;;  %v467_v24 = vrot.slane %v465_v7, 4  ;;  %v1589_v27 = vshrl.u32 %v2422_v14, 16 }
  0x88   : > { %v1561_v29 = vshll.u32 %v2419_v23, 16  ;;  %v1565_v30 = vshrl.u32 %v2419_v23, 16 }
  0x89   : > { %v639_v49 = vpack.c.b16 %v616_v37, %v615_v36  ;;  %v1750_v51 = vpack.c.b16 %v1727_v40, %v1726_v39  ;;  %v640_v37 = vpack.c.b16 %v618_v18, %v617_v17 }
  0x8a   : > { %v2850_v43 = vrot.slane %v1561_v29, 5  ;;  %v1567_v44 = vrot.slane %v1565_v30, 4 }
  0x8c   : > { %v1568_v54 = vor.u32 %v1567_v44, %v2850_v43  ;;  %v1564_v19 = vsel %vm2682_vm4, %v1559_v0, %v2850_v43  ;;  %v1591_v43 = vrot.slane %v1589_v27, 4 }
  0x8d   : > { %v1728_v33 = vunpack.c.l.b16 %v1564_v19 }
  0x8e   : > { %v1569_v1 = vrot.slane %v1568_v54, 4 }
  0x90   : > { %v1574_v21 = vsel %vm2682_vm4, %v1569_v1, %v1573_v6 }
  0x91   : > { %v1729_v38 = vunpack.c.l.b16 %v1574_v21 }
  0x93   : > { %v939_v11 = vpop.f32.mrf.mxu1  ;;  %v1751_v55 = vpack.c.b16 %v1729_v38, %v1728_v33 }
  0x94   : > { %2183 = vmatmul.msk.bf16.gmra.mxu0 %vm652_vm1, %v638_v2  ;;  %v220_v2 = vld [vmem:[%s2667_s20 + $0x68] sm:$0xf] }
  0x95   : > { %v478_v13 = vshrl.u32 %v220_v2, 16 }
  0x96   : > { %2388 = vmatmul.msk.bf16.gmra.mxu2 %vm652_vm1, %v2487_v9  ;;  %2268 = vmatmul.msk.bf16.gmra.mxu1 %vm652_vm1, %v2469_v12  ;;  %v2421_v9 = vld [vmem:[%s2667_s20 + $0x78] sm:$0xf]  ;;  %v474_v12 = vshll.u32 %v220_v2, 16  ;;  %v486_v2 = vrot.slane %v484_v48, 5 }
  0x97   : > { %2449 = vmatmul.msk.bf16.gmra.mxu3 %vm652_vm1, %v1749_v8  ;;  %v468_v8 = vshll.u32 %v219_v63, 16  ;;  %v1576_v22 = vshrl.u32 %v2421_v9, 16  ;;  %v1579_v23 = vshll.u32 %v2421_v9, 16  ;;  %v480_v32 = vrot.slane %v478_v13, 4 }
  0x98   : > { %v2888_v31 = vrot.slane %v474_v12, 5 }
  0x99   : > { %v1203_v26 = vpop.f32.mrf.mxu2  ;;  %v470_v25 = vrot.slane %v468_v8, 5  ;;  %v1578_v39 = vrot.slane %v1576_v22, 4  ;;  %v1581_v40 = vrot.slane %v1579_v23, 5  ;;  %v1609_v23 = vshrl.u32 %v2424_v5, 16 }
  0x9a   : > { %v481_v47 = vor.u32 %v480_v32, %v2888_v31 }
  0x9b   : > { %v2847_v35 = vpop.f32.mrf.mxu1  ;;  %v1582_v59 = vor.u32 %v1581_v40, %v1578_v39  ;;  %v1611_v40 = vrot.slane %v1609_v23, 4 }
  0x9c   : > { %v482_v1 = vrot.slane %v481_v47, 4 }
  0x9d   : > { %v1583_v9 = vrot.slane %v1582_v59, 4 }
  0xa1   : > { %v714_v50 = vpop.f32.mrf.mxu0  ;;  %v2854_v52 = vpop.f32.mrf.mxu2 }
  0xa2   : > { %v940_v56 = vadd.f32 %v939_v11, %v714_v50 }
  0xa3   : > { %v2860_v62 = vpop.f32.mrf.mxu1 }
  0xa4   : > { %2184 = vmatmul.msk.bf16.gmra.mxu0 %vm652_vm1, %v639_v49  ;;  %v1283_v3 = vadd.f32 %v1203_v26, %v940_v56  ;;  %v1585_v26 = vshll.u32 %v2422_v14, 16  ;;  %v2423_v49 = vld [vmem:[%s2667_s20 + $0x80] sm:$0xf]  ;;  %v2489_v56 = vld [vmem:[%s2667_s20 + $0x78] sm:$0xff] }
  0xa5   : > { %v1599_v17 = vshrl.u32 %v2423_v49, 16 }
  0xa6   : > { %2389 = vmatmul.msk.bf16.gmra.mxu2 %vm652_vm1, %v2488_v57  ;;  %2269 = vmatmul.msk.bf16.gmra.mxu1 %vm652_vm1, %v2470_v61  ;;  %v2896_v42 = vrot.slane %v1585_v26, 5  ;;  %v222_v57 = vld [vmem:[%s2667_s20 + $0x70] sm:$0xf]  ;;  %v1595_v61 = vshll.u32 %v2423_v49, 16 }
  0xa7   : > { %2450 = vmatmul.msk.bf16.gmra.mxu3 %vm652_vm1, %v1750_v51  ;;  %v494_v4 = vshll.u32 %v222_v57, 16 }
  0xa8   : > { %v1592_v60 = vor.u32 %v1591_v43, %v2896_v42  ;;  %v1597_v12 = vrot.slane %v1595_v61, 5  ;;  %v223_v61 = vld [vmem:[%s2667_s20 + $0x78] sm:$0xf] }
  0xa9   : > { %v716_v11 = vpop.f32.mrf.mxu0  ;;  %v1208_v16 = vpop.f32.mrf.mxu2  ;;  %v2921_v21 = vrot.slane %v494_v4, 5 }
  0xaa   : > { %v1823_v15 = vpop.f32.mrf.mxu3  ;;  %v942_v29 = vadd.f32 %v2847_v35, %v716_v11  ;;  %v471_v35 = vor.u32 %v470_v25, %v467_v24  ;;  %v1593_v11 = vrot.slane %v1592_v60, 4  ;;  %v238_v25 = vld [vmem:[%s2667_s20 + $0x74] sm:$0x1]  ;;  %v2472_v60 = vld [vmem:[%s2667_s20 + $0x6c] sm:$0xff] }
  0xab   : > { %v1903_v20 = vadd.f32 %v1823_v15, %v1283_v3  ;;  %v2886_v30 = vpop.f32.mrf.mxu1  ;;  %v488_v3 = vshrl.u32 %v221_v34, 16  ;;  %v487_v15 = vsel %vm2682_vm4, %v482_v1, %v486_v2  ;;  %v1601_v34 = vrot.slane %v1599_v17, 4 }
  0xac   : > { %v1284_v45 = vadd.f32 %v2854_v52, %v942_v29  ;;  %v2471_v52 = vld [vmem:[%s2667_s20 + $0x64] sm:$0xff]  ;;  %v472_v58 = vrot.slane %v471_v35, 4  ;;  %v620_v27 = vunpack.c.l.b16 %v487_v15  ;;  %v1598_v29 = vsel %vm2682_vm4, %v1593_v11, %v1597_v12  ;;  %v2426_v11 = vld [vmem:[%s2667_s20 + $0x8c] sm:$0xf] }
  0xad   : > { %v1939_v28 = vadd.f32 %v2876_v10, %v1903_v20  ;;  %v490_v20 = vrot.slane %v488_v3, 4  ;;  %v504_v39 = vshll.u32 %v238_v25, 16  ;;  %v2425_v35 = vld [vmem:[%s2667_s20 + $0x88] sm:$0x1]  ;;  %v1602_v48 = vor.u32 %v1601_v34, %v1597_v12  ;;  %v224_v3 = vld [vmem:[%s2667_s20 + $0x7c] sm:$0xf] }
  0xae   : > { %v477_v8 = vsel %vm2682_vm4, %v472_v58, %v2888_v31  ;;  %v1615_v49 = vshll.u32 %v2425_v35, 16  ;;  %v518_v12 = vshll.u32 %v224_v3, 16  ;;  %v1620_v23 = vshrl.u32 %v2426_v11, 16 }
  0xaf   : > { %v1971_v36 = vmax.f32 %v1939_v28, 0.0  ;;  %v619_v26 = vunpack.c.l.b16 %v477_v8  ;;  %v1588_v28 = vsel %vm2682_vm4, %v1583_v9, %v2896_v42  ;;  %v509_v8 = vshrl.u32 %v223_v61, 16 }
  0xb0   : > { %v1730_v43 = vunpack.c.l.b16 %v1588_v28  ;;  %v512_v9 = vshll.u32 %v223_v61, 16  ;;  %v2968_v28 = vrot.slane %v518_v12, 5 }
  0xb1   : > { %v2003_v44 = vpack.c.bf16 %v1971_v36, %v1971_v36  ;;  %v719_v46 = vpop.f32.mrf.mxu0  ;;  %v2901_v51 = vpop.f32.mrf.mxu2  ;;  %v511_v25 = vrot.slane %v509_v8, 4 }
  0xb2   : > { %v1825_v50 = vpop.f32.mrf.mxu3  ;;  %v945_v54 = vadd.f32 %v2860_v62, %v719_v46  ;;  %v498_v62 = vshrl.u32 %v222_v57, 16 }
  0xb3   : > { %2036 = vst.msk [vmem:[%s2894_s27] sm:$0xf] %vm2035_vm5, %v2003_v44  ;;  %v1904_v53 = vadd.f32 %v1825_v50, %v1284_v45  ;;  %v949_v0 = vpop.f32.mrf.mxu1  ;;  %v1731_v44 = vunpack.c.l.b16 %v1598_v29  ;;  %v641_v45 = vpack.c.b16 %v620_v27, %v619_v26  ;;  %v514_v26 = vrot.slane %v512_v9, 5  ;;  %v2429_v9 = vld [vmem:[%s2667_s20 + $0x98] sm:$0xf] }
  0xb4   : > { %2185 = vmatmul.msk.bf16.gmra.mxu0 %vm652_vm1, %v640_v37  ;;  %v1285_v7 = vadd.f32 %v1208_v16, %v945_v54  ;;  %v1605_v16 = vshll.u32 %v2424_v5, 16  ;;  %v500_v22 = vrot.slane %v498_v62, 4  ;;  %v491_v37 = vor.u32 %v490_v20, %v486_v2 }
  0xb5   : > { %v1940_v63 = vadd.f32 %v2876_v10, %v1904_v53  ;;  %v1752_v59 = vpack.c.b16 %v1731_v44, %v1730_v43  ;;  %v1603_v2 = vrot.slane %v1602_v48, 4  ;;  %v1617_v5 = vrot.slane %v1615_v49, 5  ;;  %v2428_v44 = vld [vmem:[%s2667_s20 + $0x94] sm:$0xf] }
  0xb6   : > { %2390 = vmatmul.msk.bf16.gmra.mxu2 %vm652_vm1, %v2489_v56  ;;  %2270 = vmatmul.msk.bf16.gmra.mxu1 %vm652_vm1, %v2471_v52  ;;  %v2935_v36 = vrot.slane %v1605_v16, 5  ;;  %v501_v38 = vor.u32 %v500_v22, %v2921_v21  ;;  %v492_v54 = vrot.slane %v491_v37, 4  ;;  %v506_v56 = vrot.slane %v504_v39, 5  ;;  %v2427_v16 = vld [vmem:[%s2667_s20 + $0x90] sm:$0xf] }
  0xb7   : > { %v1972_v6 = vmax.f32 %v1940_v63, 0.0  ;;  %2451 = vmatmul.msk.bf16.gmra.mxu3 %vm652_vm1, %v1751_v55  ;;  %v1623_v27 = vshll.u32 %v2426_v11, 16  ;;  %v515_v43 = vor.u32 %v514_v26, %v511_v25 }
  0xb8   : > { %v502_v55 = vrot.slane %v501_v38, 4  ;;  %v1612_v57 = vor.u32 %v1611_v40, %v2935_v36  ;;  %v497_v4 = vsel %vm2682_vm4, %v492_v54, %v2921_v21  ;;  %v1608_v17 = vsel %vm2682_vm4, %v1603_v2, %v2935_v36  ;;  %v225_v38 = vld [vmem:[%s2667_s20 + $0x80] sm:$0xf] }
  0xb9   : > { %v2004_v13 = vpack.c.bf16 %v1972_v6, %v1972_v6  ;;  %v721_v14 = vpop.f32.mrf.mxu0  ;;  %v1213_v19 = vpop.f32.mrf.mxu2  ;;  %v1732_v35 = vunpack.c.l.b16 %v1608_v17  ;;  %v532_v12 = vshrl.u32 %v225_v38, 16 }
  0xba   : > { %v1828_v18 = vpop.f32.mrf.mxu3  ;;  %v947_v32 = vadd.f32 %v2886_v30, %v721_v14  ;;  %v507_v62 = vsel %vm2682_vm4, %v502_v55, %v506_v56 }
  0xbb   : > { %2037 = vst.msk [vmem:[%s2894_s27 + $0x4] sm:$0xf] %vm2035_vm5, %v2004_v13  ;;  %v1905_v24 = vadd.f32 %v1828_v18, %v1285_v7  ;;  %v2933_v33 = vpop.f32.mrf.mxu1  ;;  %v522_v13 = vshrl.u32 %v224_v3, 16  ;;  %v622_v21 = vunpack.c.l.b16 %v507_v62 }
  0xbc   : > { %v1286_v30 = vadd.f32 %v2901_v51, %v947_v32  ;;  %v2490_v51 = vld [vmem:[%s2667_s20 + $0x80] sm:$0xff]  ;;  %v1633_v32 = vshrl.u32 %v2427_v16, 16 }
  0xbd   : > { %v1941_v31 = vadd.f32 %v2876_v10, %v1905_v24  ;;  %v524_v29 = vrot.slane %v522_v13, 4 }
  0xbe   : > { %v1635_v49 = vrot.slane %v1633_v32, 4 }
  0xbf   : > { %v1973_v42 = vmax.f32 %v1941_v31, 0.0  ;;  %v1629_v31 = vshll.u32 %v2427_v16, 16 }
  0xc1   : > { %v2005_v46 = vpack.c.bf16 %v1973_v42, %v1973_v42  ;;  %v724_v47 = vpop.f32.mrf.mxu0  ;;  %v2940_v53 = vpop.f32.mrf.mxu2  ;;  %v1631_v48 = vrot.slane %v1629_v31, 5 }
  0xc2   : > { %v1830_v50 = vpop.f32.mrf.mxu3  ;;  %v950_v58 = vadd.f32 %v949_v0, %v724_v47  ;;  %v1613_v0 = vrot.slane %v1612_v57, 4  ;;  %v528_v47 = vshll.u32 %v225_v38, 16 }
  0xc3   : > { %2038 = vst.msk [vmem:[%s2894_s27 + $0x8] sm:$0xf] %vm2035_vm5, %v2005_v46  ;;  %v1906_v52 = vadd.f32 %v1830_v50, %v1286_v30  ;;  %v954_v1 = vpop.f32.mrf.mxu1  ;;  %v1625_v46 = vrot.slane %v1623_v27, 5  ;;  %v525_v30 = vor.u32 %v524_v29, %v2968_v28 }
  0xc4   : > { %2186 = vmatmul.msk.bf16.gmra.mxu0 %vm652_vm1, %v641_v45  ;;  %v1287_v7 = vadd.f32 %v1213_v19, %v950_v58  ;;  %v621_v19 = vunpack.c.l.b16 %v497_v4  ;;  %v1618_v22 = vsel %vm2682_vm4, %v1613_v0, %v1617_v5  ;;  %v1622_v45 = vrot.slane %v1620_v23, 4  ;;  %v226_v5 = vld [vmem:[%s2667_s20 + $0x84] sm:$0xf] }
  0xc5   : > { %v1942_v63 = vadd.f32 %v2876_v10, %v1906_v52  ;;  %v1733_v40 = vunpack.c.l.b16 %v1618_v22  ;;  %v1639_v52 = vshll.u32 %v2428_v44, 16  ;;  %v526_v2 = vrot.slane %v525_v30, 4 }
  0xc6   : > { %2391 = vmatmul.msk.bf16.gmra.mxu2 %vm652_vm1, %v2490_v51  ;;  %2271 = vmatmul.msk.bf16.gmra.mxu1 %vm652_vm1, %v2472_v60  ;;  %v642_v39 = vpack.c.b16 %v622_v21, %v621_v19  ;;  %v2491_v51 = vld [vmem:[%s2667_s20 + $0x8c] sm:$0xff]  ;;  %v516_v60 = vrot.slane %v515_v43, 4  ;;  %v1626_v61 = vor.u32 %v1625_v46, %v1622_v45  ;;  %v2983_v3 = vrot.slane %v528_v47, 5  ;;  %v2430_v45 = vld [vmem:[%s2667_s20 + $0x9c] sm:$0x1] }
  0xc7   : > { %v1974_v6 = vmax.f32 %v1942_v63, 0.0  ;;  %2452 = vmatmul.msk.bf16.gmra.mxu3 %vm652_vm1, %v1752_v59  ;;  %v1753_v56 = vpack.c.b16 %v1733_v40, %v1732_v35  ;;  %v2473_v63 = vld [vmem:[%s2667_s20 + $0x78] sm:$0xff]  ;;  %v2986_v0 = vrot.slane %v1639_v52, 5  ;;  %v538_v16 = vshll.u32 %v226_v5, 16 }
  0xc8   : > { %v1627_v8 = vrot.slane %v1626_v61, 4  ;;  %v531_v11 = vsel %vm2682_vm4, %v526_v2, %v2983_v3  ;;  %v1649_v21 = vshll.u32 %v2429_v9, 16  ;;  %v1653_v22 = vshrl.u32 %v2429_v9, 16  ;;  %v227_v61 = vld [vmem:[%s2667_s20 + $0x8c] sm:$0xf] }
  0xc9   : > { %v2006_v14 = vpack.c.bf16 %v1974_v6, %v1974_v6  ;;  %v726_v15 = vpop.f32.mrf.mxu0  ;;  %v1218_v20 = vpop.f32.mrf.mxu2  ;;  %v624_v25 = vunpack.c.l.b16 %v531_v11  ;;  %v3011_v38 = vrot.slane %v538_v16, 5  ;;  %v1659_v52 = vshll.u32 %v2430_v45, 16  ;;  %v2431_v11 = vld [vmem:[%s2667_s20 + $0xa0] sm:$0xf] }
  0xca   : > { %v1833_v18 = vpop.f32.mrf.mxu3  ;;  %v952_v36 = vadd.f32 %v2933_v33, %v726_v15  ;;  %v1632_v26 = vsel %vm2682_vm4, %v1627_v8, %v1631_v48  ;;  %v3013_v35 = vrot.slane %v1649_v21, 5  ;;  %v1655_v40 = vrot.slane %v1653_v22, 4 }
  0xcb   : > { %2039 = vst.msk [vmem:[%s2894_s27 + $0xc] sm:$0xf] %vm2035_vm5, %v2006_v14  ;;  %v1907_v24 = vadd.f32 %v1833_v18, %v1287_v7  ;;  %v2972_v37 = vpop.f32.mrf.mxu1  ;;  %v521_v7 = vsel %vm2682_vm4, %v516_v60, %v2968_v28  ;;  %v1643_v14 = vshrl.u32 %v2428_v44, 16  ;;  %v542_v18 = vshrl.u32 %v226_v5, 16  ;;  %v2492_v60 = vld [vmem:[%s2667_s20 + $0x94] sm:$0xff] }
  0xcc   : > { %v1288_v50 = vadd.f32 %v2940_v53, %v952_v36  ;;  %v1636_v53 = vor.u32 %v1635_v49, %v1631_v48  ;;  %v534_v28 = vrot.slane %v532_v12, 4  ;;  %v239_v36 = vld [vmem:[%s2667_s20 + $0x88] sm:$0x1]  ;;  %v1734_v43 = vunpack.c.l.b16 %v1632_v26  ;;  %v228_v5 = vld [vmem:[%s2667_s20 + $0x90] sm:$0xf] }
  0xcd   : > { %v1943_v34 = vadd.f32 %v2876_v10, %v1907_v24  ;;  %v623_v24 = vunpack.c.l.b16 %v521_v7  ;;  %v1645_v29 = vrot.slane %v1643_v14, 4  ;;  %v556_v7 = vshll.u32 %v227_v61, 16  ;;  %v2432_v14 = vld [vmem:[%s2667_s20 + $0xa4] sm:$0xf] }
  0xce   : > { %v1637_v13 = vrot.slane %v1636_v53, 4  ;;  %v535_v30 = vor.u32 %v534_v28, %v2983_v3  ;;  %v562_v12 = vshll.u32 %v228_v5, 16  ;;  %v1673_v28 = vshll.u32 %v2432_v14, 16 }
  0xcf   : > { %v1975_v42 = vmax.f32 %v1943_v34, 0.0  ;;  %v643_v46 = vpack.c.b16 %v624_v25, %v623_v24  ;;  %v558_v24 = vrot.slane %v556_v7, 5  ;;  %v1664_v25 = vshrl.u32 %v2431_v11, 16 }
  0xd0   : > { %v1642_v27 = vsel %vm2682_vm4, %v1637_v13, %v2986_v0  ;;  %v566_v13 = vshrl.u32 %v228_v5, 16 }
  0xd1   : > { %v2007_v33 = vpack.c.bf16 %v1975_v42, %v1975_v42  ;;  %v729_v54 = vpop.f32.mrf.mxu0  ;;  %v1220_v57 = vpop.f32.mrf.mxu2  ;;  %v1735_v44 = vunpack.c.l.b16 %v1642_v27  ;;  %v1667_v27 = vshll.u32 %v2431_v11, 16 }
  0xd2   : > { %v1835_v55 = vpop.f32.mrf.mxu3  ;;  %v955_v59 = vadd.f32 %v954_v1, %v729_v54 }
  0xd3   : > { %2040 = vst.msk [vmem:[%s2894_s27 + $0x10] sm:$0xf] %vm2035_vm5, %v2007_v33  ;;  %v1908_v58 = vadd.f32 %v1835_v55, %v1288_v50  ;;  %v959_v62 = vpop.f32.mrf.mxu1  ;;  %v1646_v50 = vor.u32 %v1645_v29, %v2986_v0  ;;  %v1677_v29 = vshrl.u32 %v2432_v14, 16 }
  0xd4   : > { %2187 = vmatmul.msk.bf16.gmra.mxu0 %vm652_vm1, %v642_v39  ;;  %v1289_v1 = vadd.f32 %v1218_v20, %v955_v59  ;;  %v544_v39 = vrot.slane %v542_v18, 4 }
  0xd5   : > { %v1944_v4 = vadd.f32 %v2876_v10, %v1908_v58  ;;  %v1647_v0 = vrot.slane %v1646_v50, 4 }
  0xd6   : > { %2392 = vmatmul.msk.bf16.gmra.mxu2 %vm652_vm1, %v2491_v51  ;;  %2272 = vmatmul.msk.bf16.gmra.mxu1 %vm652_vm1, %v2473_v63  ;;  %v545_v33 = vor.u32 %v544_v39, %v3011_v38  ;;  %v1754_v51 = vpack.c.b16 %v1735_v44, %v1734_v43  ;;  %v536_v63 = vrot.slane %v535_v30, 4 }
  0xd7   : > { %v1976_v6 = vmax.f32 %v1944_v4, 0.0  ;;  %2453 = vmatmul.msk.bf16.gmra.mxu3 %vm652_vm1, %v1753_v56  ;;  %v1656_v56 = vor.u32 %v1655_v40, %v3013_v35 }
  0xd8   : > { %v546_v53 = vrot.slane %v545_v33, 4  ;;  %v541_v16 = vsel %vm2682_vm4, %v536_v63, %v3011_v38  ;;  %v568_v38 = vrot.slane %v566_v13, 4 }
  0xd9   : > { %v2008_v15 = vpack.c.bf16 %v1976_v6, %v1976_v6  ;;  %v731_v17 = vpop.f32.mrf.mxu0  ;;  %v1223_v19 = vpop.f32.mrf.mxu2  ;;  %v1657_v6 = vrot.slane %v1656_v56, 4 }
  0xda   : > { %v1838_v20 = vpop.f32.mrf.mxu3  ;;  %v957_v32 = vadd.f32 %v2972_v37, %v731_v17  ;;  %v548_v37 = vshll.u32 %v239_v36, 16  ;;  %v564_v36 = vrot.slane %v562_v12, 5 }
  0xdb   : > { %2041 = vst.msk [vmem:[%s2894_s27 + $0x14] sm:$0xf] %vm2035_vm5, %v2008_v15  ;;  %v1909_v23 = vadd.f32 %v1838_v20, %v1289_v1  ;;  %v3008_v34 = vpop.f32.mrf.mxu1  ;;  %v1661_v1 = vrot.slane %v1659_v52, 5  ;;  %v1652_v20 = vsel %vm2682_vm4, %v1647_v0, %v3013_v35  ;;  %v2475_v0 = vld [vmem:[%s2667_s20 + $0x8c] sm:$0xff] }
  0xdc   : > { %v1290_v48 = vadd.f32 %v1220_v57, %v957_v32  ;;  %v2474_v57 = vld [vmem:[%s2667_s20 + $0x80] sm:$0xff]  ;;  %v550_v4 = vrot.slane %v548_v37, 5  ;;  %v1736_v43 = vunpack.c.l.b16 %v1652_v20  ;;  %v3055_v37 = vld [vmem:[%s2667_s20 + $0xa8] sm:$0xf]  ;;  %v569_v50 = vor.u32 %v568_v38, %v564_v36  ;;  %v2434_v20 = vld [vmem:[%s2667_s20 + $0xac] sm:$0xf] }
  0xdd   : > { %v1945_v31 = vadd.f32 %v2876_v10, %v1909_v23  ;;  %v1662_v22 = vsel %vm2682_vm4, %v1657_v6, %v1661_v1 }
  0xde   : > { %v551_v18 = vsel %vm2682_vm4, %v546_v53, %v550_v4  ;;  %v1737_v44 = vunpack.c.l.b16 %v1662_v22 }
  0xdf   : > { %v1977_v42 = vmax.f32 %v1945_v31, 0.0  ;;  %v625_v31 = vunpack.c.l.b16 %v541_v16  ;;  %v626_v32 = vunpack.c.l.b16 %v551_v18 }
  0xe1   : > { %v2009_v47 = vpack.c.bf16 %v1977_v42, %v1977_v42  ;;  %v734_v49 = vpop.f32.mrf.mxu0  ;;  %v3019_v55 = vpop.f32.mrf.mxu2  ;;  %v229_v42 = vld [vmem:[%s2667_s20 + $0x94] sm:$0xf]  ;;  %v644_v33 = vpack.c.b16 %v626_v32, %v625_v31  ;;  %v1697_v31 = vshrl.u32 %v2434_v20, 16 }
  0xe2   : > { %v1840_v54 = vpop.f32.mrf.mxu3  ;;  %v960_v59 = vadd.f32 %v959_v62, %v734_v49  ;;  %v553_v62 = vshrl.u32 %v227_v61, 16  ;;  %v1679_v49 = vrot.slane %v1677_v29, 4  ;;  %v1683_v61 = vshll.u32 %v3055_v37, 16 }
  0xe3   : > { %2042 = vst.msk [vmem:[%s2894_s27 + $0x18] sm:$0xf] %vm2035_vm5, %v2009_v47  ;;  %v1910_v58 = vadd.f32 %v1840_v54, %v1290_v48  ;;  %v3029_v3 = vpop.f32.mrf.mxu1  ;;  %v1669_v47 = vrot.slane %v1667_v27, 5  ;;  %v1675_v48 = vrot.slane %v1673_v28, 5  ;;  %v572_v54 = vshll.u32 %v229_v42, 16 }
  0xe4   : > { %2188 = vmatmul.msk.bf16.gmra.mxu0 %vm652_vm1, %v643_v46  ;;  %v1291_v9 = vadd.f32 %v1223_v19, %v960_v59  ;;  %v555_v23 = vrot.slane %v553_v62, 4  ;;  %v1666_v46 = vrot.slane %v1664_v25, 4  ;;  %v1755_v59 = vpack.c.b16 %v1737_v44, %v1736_v43 }
  0xe5   : > { %v1946_v2 = vadd.f32 %v2876_v10, %v1910_v58  ;;  %v1680_v4 = vor.u32 %v1679_v49, %v1675_v48  ;;  %v3065_v5 = vrot.slane %v572_v54, 5  ;;  %v3070_v7 = vrot.slane %v1683_v61, 5  ;;  %v2494_v61 = vld [vmem:[%s2667_s20 + $0xa8] sm:$0xff] }
  0xe6   : > { %2393 = vmatmul.msk.bf16.gmra.mxu2 %vm652_vm1, %v2492_v60  ;;  %2273 = vmatmul.msk.bf16.gmra.mxu1 %vm652_vm1, %v2474_v57  ;;  %v559_v45 = vor.u32 %v558_v24, %v555_v23  ;;  %v1670_v53 = vor.u32 %v1669_v47, %v1666_v46  ;;  %v576_v14 = vshrl.u32 %v229_v42, 16  ;;  %v1687_v27 = vshrl.u32 %v3055_v37, 16  ;;  %v240_v42 = vld [vmem:[%s2667_s20 + $0x9c] sm:$0x1] }
  0xe7   : > { %v1978_v8 = vmax.f32 %v1946_v2, 0.0  ;;  %2454 = vmatmul.msk.bf16.gmra.mxu3 %vm652_vm1, %v1754_v51  ;;  %v2493_v2 = vld [vmem:[%s2667_s20 + $0xa0] sm:$0xff]  ;;  %v1681_v12 = vrot.slane %v1680_v4, 4  ;;  %v1693_v29 = vshll.u32 %v2434_v20, 16  ;;  %v592_v54 = vshll.u32 %v240_v42, 16 }
  0xe8   : > { %v560_v60 = vrot.slane %v559_v45, 4  ;;  %v1671_v11 = vrot.slane %v1670_v53, 4  ;;  %v578_v28 = vrot.slane %v576_v14, 4  ;;  %v1689_v37 = vrot.slane %v1687_v27, 4 }
  0xe9   : > { %v2010_v15 = vpack.c.bf16 %v1978_v8, %v1978_v8  ;;  %v736_v17 = vpop.f32.mrf.mxu0  ;;  %v1228_v21 = vpop.f32.mrf.mxu2  ;;  %v230_v8 = vld [vmem:[%s2667_s20 + $0x98] sm:$0xf]  ;;  %v1695_v47 = vrot.slane %v1693_v29, 5 }
  0xea   : > { %v1843_v19 = vpop.f32.mrf.mxu3  ;;  %v962_v35 = vadd.f32 %v3008_v34, %v736_v17  ;;  %v565_v62 = vsel %vm2682_vm4, %v560_v60, %v564_v36  ;;  %v582_v16 = vshll.u32 %v230_v8, 16  ;;  %v586_v18 = vshrl.u32 %v230_v8, 16 }
  0xeb   : > { %2043 = vst.msk [vmem:[%s2894_s27 + $0x1c] sm:$0xf] %vm2035_vm5, %v2010_v15  ;;  %v1911_v26 = vadd.f32 %v1843_v19, %v1291_v9  ;;  %v3051_v40 = vpop.f32.mrf.mxu1  ;;  %v1676_v25 = vsel %vm2682_vm4, %v1671_v11, %v1675_v48  ;;  %v1699_v48 = vrot.slane %v1697_v31, 4 }
  0xec   : > { %v1292_v56 = vadd.f32 %v3019_v55, %v962_v35  ;;  %v570_v55 = vrot.slane %v569_v50, 4  ;;  %v588_v35 = vrot.slane %v586_v18, 4  ;;  %v1738_v45 = vunpack.c.l.b16 %v1676_v25 }
  0xed   : > { %v1947_v39 = vadd.f32 %v2876_v10, %v1911_v26  ;;  %v1686_v26 = vsel %vm2682_vm4, %v1681_v12, %v3070_v7 }
  0xee   : > { %v575_v13 = vsel %vm2682_vm4, %v570_v55, %v3065_v5  ;;  %v1739_v46 = vunpack.c.l.b16 %v1686_v26 }
  0xef   : > { %v1979_v30 = vmax.f32 %v1947_v39, 0.0  ;;  %v628_v24 = vunpack.c.l.b16 %v575_v13  ;;  %v584_v39 = vrot.slane %v582_v16, 5 }
  0xf0   : > { %v1756_v60 = vpack.c.b16 %v1739_v46, %v1738_v45 }
  0xf1   : > { %v2011_v34 = vpack.c.bf16 %v1979_v30, %v1979_v30  ;;  %v739_v52 = vpop.f32.mrf.mxu0  ;;  %v1230_v51 = vpop.f32.mrf.mxu2  ;;  %v579_v30 = vor.u32 %v578_v28, %v3065_v5  ;;  %v589_v50 = vor.u32 %v588_v35, %v584_v39  ;;  %v594_v5 = vrot.slane %v592_v54, 5 }
  0xf2   : > { %v1845_v58 = vpop.f32.mrf.mxu3  ;;  %v965_v63 = vadd.f32 %v3029_v3, %v739_v52 }
  0xf3   : > { %2044 = vst.msk [vmem:[%s2894_s27 + $0x20] sm:$0xf] %vm2035_vm5, %v2011_v34  ;;  %v1912_v57 = vadd.f32 %v1845_v58, %v1292_v56  ;;  %v969_v1 = vpop.f32.mrf.mxu1  ;;  %v2435_v34 = vld [vmem:[%s2667_s20 + $0xb0] sm:$0x1]  ;;  %v590_v55 = vrot.slane %v589_v50, 4 }
  0xf4   : > { %2189 = vmatmul.msk.bf16.gmra.mxu0 %vm652_vm1, %v644_v33  ;;  %v1293_v9 = vadd.f32 %v1228_v21, %v965_v63  ;;  %v627_v21 = vunpack.c.l.b16 %v565_v62  ;;  %v1690_v63 = vor.u32 %v1689_v37, %v3070_v7  ;;  %v1703_v53 = vshll.u32 %v2435_v34, 16 }
  0xf5   : > { %v1948_v6 = vadd.f32 %v2876_v10, %v1912_v57  ;;  %v2476_v57 = vld [vmem:[%s2667_s20 + $0x94] sm:$0xff]  ;;  %v595_v12 = vsel %vm2682_vm4, %v590_v55, %v594_v5 }
  0xf6   : > { %2394 = vmatmul.msk.bf16.gmra.mxu2 %vm652_vm1, %v2493_v2  ;;  %2274 = vmatmul.msk.bf16.gmra.mxu1 %vm652_vm1, %v2475_v0  ;;  %v645_v44 = vpack.c.b16 %v628_v24, %v627_v21  ;;  %v1700_v2 = vor.u32 %v1699_v48, %v1695_v47  ;;  %v580_v0 = vrot.slane %v579_v30, 4  ;;  %v1691_v62 = vrot.slane %v1690_v63, 4 }
  0xf7   : > { %v1980_v3 = vmax.f32 %v1948_v6, 0.0  ;;  %2455 = vmatmul.msk.bf16.gmra.mxu3 %vm652_vm1, %v1755_v59  ;;  %v1705_v7 = vrot.slane %v1703_v53, 5  ;;  %v630_v16 = vunpack.c.l.b16 %v595_v12 }
  0xf8   : > { %v1701_v8 = vrot.slane %v1700_v2, 4  ;;  %v585_v11 = vsel %vm2682_vm4, %v580_v0, %v584_v39  ;;  %v1696_v18 = vsel %vm2682_vm4, %v1691_v62, %v1695_v47 }
  0xf9   : > { %v2012_v15 = vpack.c.bf16 %v1980_v3, %v1980_v3  ;;  %v741_v17 = vpop.f32.mrf.mxu0  ;;  %v1233_v22 = vpop.f32.mrf.mxu2  ;;  %v1740_v24 = vunpack.c.l.b16 %v1696_v18 }
  0xfa   : > { %v1848_v19 = vpop.f32.mrf.mxu3  ;;  %v967_v36 = vadd.f32 %v3051_v40, %v741_v17  ;;  %v629_v17 = vunpack.c.l.b16 %v585_v11  ;;  %v1706_v20 = vsel %vm2682_vm4, %v1701_v8, %v1705_v7 }
  0xfb   : > { %2045 = vst.msk [vmem:[%s2894_s27 + $0x24] sm:$0xf] %vm2035_vm5, %v2012_v15  ;;  %v1913_v23 = vadd.f32 %v1848_v19, %v1293_v9  ;;  %v971_v38 = vpop.f32.mrf.mxu1  ;;  %v1741_v25 = vunpack.c.l.b16 %v1706_v20 }
  0xfc   : > { %v1294_v33 = vadd.f32 %v1230_v51, %v967_v36  ;;  %v646_v26 = vpack.c.b16 %v630_v16, %v629_v17 }
  0xfd   : > { %v1949_v32 = vadd.f32 %v2876_v10, %v1913_v23  ;;  %v1757_v41 = vpack.c.b16 %v1741_v25, %v1740_v24 }
  0xff   : > { %v1981_v43 = vmax.f32 %v1949_v32, 0.0 }
 0x101   : > { %v2013_v49 = vpack.c.bf16 %v1981_v43, %v1981_v43  ;;  %v744_v40 = vpop.f32.mrf.mxu0  ;;  %v1235_v52 = vpop.f32.mrf.mxu2 }
 0x102   : > { %v1850_v56 = vpop.f32.mrf.mxu3  ;;  %v970_v59 = vadd.f32 %v969_v1, %v744_v40 }
 0x103   : > { %2046 = vst.msk [vmem:[%s2894_s27 + $0x28] sm:$0xf] %vm2035_vm5, %v2013_v49  ;;  %v1914_v58 = vadd.f32 %v1850_v56, %v1294_v33  ;;  %v974_v4 = vpop.f32.mrf.mxu1 }
 0x104   : > { %2190 = vmatmul.msk.bf16.gmra.mxu0 %vm652_vm1, %v645_v44  ;;  %v1295_v1 = vadd.f32 %v1233_v22, %v970_v59 }
 0x105   : > { %v1950_v51 = vadd.f32 %v2876_v10, %v1914_v58 }
 0x106   : > { %2395 = vmatmul.msk.bf16.gmra.mxu2 %vm652_vm1, %v2494_v61  ;;  %2275 = vmatmul.msk.bf16.gmra.mxu1 %vm652_vm1, %v2476_v57 }
 0x107   : > { %v1982_v6 = vmax.f32 %v1950_v51, 0.0  ;;  %2456 = vmatmul.msk.bf16.gmra.mxu3 %vm652_vm1, %v1756_v60 }
 0x109   : > { %v2014_v3 = vpack.c.bf16 %v1982_v6, %v1982_v6  ;;  %v746_v9 = vpop.f32.mrf.mxu0  ;;  %v1238_v14 = vpop.f32.mrf.mxu2 }
 0x10a   : > { %v1853_v13 = vpop.f32.mrf.mxu3  ;;  %v972_v22 = vadd.f32 %v971_v38, %v746_v9 }
 0x10b   : > { %2047 = vst.msk [vmem:[%s2894_s27 + $0x2c] sm:$0xf] %vm2035_vm5, %v2014_v3  ;;  %v1915_v15 = vadd.f32 %v1853_v13, %v1295_v1  ;;  %v976_v21 = vpop.f32.mrf.mxu1 }
 0x10c   : > { %v1296_v28 = vadd.f32 %v1235_v52, %v972_v22 }
 0x10d   : > { %v1951_v19 = vadd.f32 %v2876_v10, %v1915_v15 }
 0x10f   : > { %v1983_v23 = vmax.f32 %v1951_v19, 0.0 }
 0x111   : > { %v2015_v27 = vpack.c.bf16 %v1983_v23, %v1983_v23  ;;  %v749_v29 = vpop.f32.mrf.mxu0  ;;  %v1240_v32 = vpop.f32.mrf.mxu2 }
 0x112   : > { %v1855_v31 = vpop.f32.mrf.mxu3  ;;  %v975_v39 = vadd.f32 %v974_v4, %v749_v29 }
 0x113   : > { %2048 = vst.msk [vmem:[%s2894_s27 + $0x30] sm:$0xf] %vm2035_vm5, %v2015_v27  ;;  %v1916_v36 = vadd.f32 %v1855_v31, %v1296_v28  ;;  %v979_v35 = vpop.f32.mrf.mxu1 }
 0x114   : > { %2191 = vmatmul.msk.bf16.gmra.mxu0 %vm652_vm1, %v646_v26  ;;  %v1297_v43 = vadd.f32 %v1238_v14, %v975_v39 }
 0x115   : > { %v1952_v38 = vadd.f32 %v2876_v10, %v1916_v36 }
 0x117   : > { %v1984_v42 = vmax.f32 %v1952_v38, 0.0  ;;  %2457 = vmatmul.msk.bf16.gmra.mxu3 %vm652_vm1, %v1757_v41 }
 0x119   : > { %v2016_v44 = vpack.c.bf16 %v1984_v42, %v1984_v42  ;;  %v751_v45 = vpop.f32.mrf.mxu0  ;;  %v1243_v30 = vpop.f32.mrf.mxu2 }
 0x11a   : > { %v1858_v46 = vpop.f32.mrf.mxu3  ;;  %v977_v48 = vadd.f32 %v976_v21, %v751_v45 }
 0x11b   : > { %2049 = vst.msk [vmem:[%s2894_s27 + $0x34] sm:$0xf] %vm2035_vm5, %v2016_v44  ;;  %v1917_v37 = vadd.f32 %v1858_v46, %v1297_v43  ;;  %v981_v49 = vpop.f32.mrf.mxu1  ;;  %v3142_v46 = vld [vmem:[%s3197_s2] ss:$0 sm:$0xff] }
 0x11c   : > { %v1298_v50 = vadd.f32 %v1240_v32, %v977_v48 }
 0x11d   : > { %v1953_v47 = vadd.f32 %v2876_v10, %v1917_v37 }
 0x11f   : > { %v1985_v33 = vmax.f32 %v1953_v47, 0.0 }
 0x121   : > { %v2017_v40 = vpack.c.bf16 %v1985_v33, %v1985_v33  ;;  %v754_v54 = vpop.f32.mrf.mxu0  ;;  %v1245_v56 = vpop.f32.mrf.mxu2 }
 0x122   : > { %v1860_v34 = vpop.f32.mrf.mxu3  ;;  %v980_v58 = vadd.f32 %v979_v35, %v754_v54 }
 0x123   : > { %2050 = vst.msk [vmem:[%s2894_s27 + $0x38] sm:$0xf] %vm2035_vm5, %v2017_v40  ;;  %v1918_v52 = vadd.f32 %v1860_v34, %v1298_v50  ;;  %v984_v60 = vpop.f32.mrf.mxu1 }
 0x124   : > { %v1299_v57 = vadd.f32 %v1243_v30, %v980_v58 }
 0x125   : > { %v1954_v59 = vadd.f32 %v2876_v10, %v1918_v52 }
 0x127   : > { %v1986_v61 = vmax.f32 %v1954_v59, 0.0 }
 0x129   : > { %v2018_v63 = vpack.c.bf16 %v1986_v61, %v1986_v61  ;;  %v756_v2 = vpop.f32.mrf.mxu0  ;;  %v1248_v51 = vpop.f32.mrf.mxu2 }
 0x12a   : > { %v1863_v53 = vpop.f32.mrf.mxu3  ;;  %v982_v55 = vadd.f32 %v981_v49, %v756_v2 }
 0x12b   : > { %2051 = vst.msk [vmem:[%s2894_s27 + $0x3c] sm:$0xf] %vm2035_vm5, %v2018_v63  ;;  %v1919_v4 = vadd.f32 %v1863_v53, %v1299_v57  ;;  %v986_v5 = vpop.f32.mrf.mxu1 }
 0x12c   : > { %v1300_v62 = vadd.f32 %v1245_v56, %v982_v55 }
 0x12d   : > { %v1955_v0 = vadd.f32 %v2876_v10, %v1919_v4 }
 0x12f   : > { %v1987_v6 = vmax.f32 %v1955_v0, 0.0 }
 0x131   : > { %v2019_v1 = vpack.c.bf16 %v1987_v6, %v1987_v6  ;;  %v759_v8 = vpop.f32.mrf.mxu0  ;;  %v1250_v3 = vpop.f32.mrf.mxu2 }
 0x132   : > { %v1865_v7 = vpop.f32.mrf.mxu3  ;;  %v985_v11 = vadd.f32 %v984_v60, %v759_v8 }
 0x133   : > { %2052 = vst.msk [vmem:[%s2894_s27 + $0x40] sm:$0xf] %vm2035_vm5, %v2019_v1  ;;  %v1920_v9 = vadd.f32 %v1865_v7, %v1300_v62  ;;  %v989_v13 = vpop.f32.mrf.mxu1 }
 0x134   : > { %v1301_v15 = vadd.f32 %v1248_v51, %v985_v11 }
 0x135   : > { %v1956_v12 = vadd.f32 %v2876_v10, %v1920_v9 }
 0x137   : > { %v1988_v14 = vmax.f32 %v1956_v12, 0.0 }
 0x139   : > { %v2020_v17 = vpack.c.bf16 %v1988_v14, %v1988_v14  ;;  %v761_v16 = vpop.f32.mrf.mxu0  ;;  %v1253_v20 = vpop.f32.mrf.mxu2 }
 0x13a   : > { %v1868_v18 = vpop.f32.mrf.mxu3  ;;  %v987_v21 = vadd.f32 %v986_v5, %v761_v16 }
 0x13b   : > { %2053 = vst.msk [vmem:[%s2894_s27 + $0x44] sm:$0xf] %vm2035_vm5, %v2020_v17  ;;  %v1921_v19 = vadd.f32 %v1868_v18, %v1301_v15  ;;  %v991_v23 = vpop.f32.mrf.mxu1 }
 0x13c   : > { %v1302_v26 = vadd.f32 %v1250_v3, %v987_v21 }
 0x13d   : > { %v1957_v22 = vadd.f32 %v2876_v10, %v1921_v19 }
 0x13f   : > { %v1989_v24 = vmax.f32 %v1957_v22, 0.0 }
 0x141   : > { %v2021_v25 = vpack.c.bf16 %v1989_v24, %v1989_v24  ;;  %v764_v27 = vpop.f32.mrf.mxu0  ;;  %v1255_v29 = vpop.f32.mrf.mxu2 }
 0x142   : > { %v1870_v28 = vpop.f32.mrf.mxu3  ;;  %v990_v32 = vadd.f32 %v989_v13, %v764_v27 }
 0x143   : > { %2054 = vst.msk [vmem:[%s2894_s27 + $0x48] sm:$0xf] %vm2035_vm5, %v2021_v25  ;;  %v1922_v31 = vadd.f32 %v1870_v28, %v1302_v26  ;;  %v994_v39 = vpop.f32.mrf.mxu1 }
 0x144   : > { %v1303_v38 = vadd.f32 %v1253_v20, %v990_v32 }
 0x145   : > { %v1958_v36 = vadd.f32 %v2876_v10, %v1922_v31 }
 0x147   : > { %v1990_v41 = vmax.f32 %v1958_v36, 0.0 }
 0x149   : > { %v2022_v35 = vpack.c.bf16 %v1990_v41, %v1990_v41  ;;  %v766_v42 = vpop.f32.mrf.mxu0  ;;  %v1258_v44 = vpop.f32.mrf.mxu2 }
 0x14a   : > { %v1873_v43 = vpop.f32.mrf.mxu3  ;;  %v992_v37 = vadd.f32 %v991_v23, %v766_v42 }
 0x14b   : > { %2055 = vst.msk [vmem:[%s2894_s27 + $0x4c] sm:$0xf] %vm2035_vm5, %v2022_v35  ;;  %v1923_v45 = vadd.f32 %v1873_v43, %v1303_v38  ;;  %v996_v10 = vpop.f32.mrf.mxu1 }
 0x14c   : > { %v1304_v49 = vadd.f32 %v1255_v29, %v992_v37 }
 0x14d   : > { %v1959_v30 = vadd.f32 %v3142_v46, %v1923_v45 }
 0x14f   : > { %v1991_v47 = vmax.f32 %v1959_v30, 0.0 }
 0x151   : > { %v2023_v48 = vpack.c.bf16 %v1991_v47, %v1991_v47  ;;  %v769_v33 = vpop.f32.mrf.mxu0  ;;  %v1260_v50 = vpop.f32.mrf.mxu2 }
 0x152   : > { %v1875_v40 = vpop.f32.mrf.mxu3  ;;  %v995_v34 = vadd.f32 %v994_v39, %v769_v33 }
 0x153   : > { %2056 = vst.msk [vmem:[%s2894_s27 + $0x50] sm:$0xf] %vm2035_vm5, %v2023_v48  ;;  %v1924_v54 = vadd.f32 %v1875_v40, %v1304_v49  ;;  %v999_v52 = vpop.f32.mrf.mxu1 }
 0x154   : > { %v1305_v59 = vadd.f32 %v1258_v44, %v995_v34 }
 0x155   : > { %v1960_v56 = vadd.f32 %v3142_v46, %v1924_v54 }
 0x157   : > { %v1992_v58 = vmax.f32 %v1960_v56, 0.0 }
 0x159   : > { %v2024_v60 = vpack.c.bf16 %v1992_v58, %v1992_v58  ;;  %v771_v61 = vpop.f32.mrf.mxu0  ;;  %v1263_v63 = vpop.f32.mrf.mxu2 }
 0x15a   : > { %v1878_v57 = vpop.f32.mrf.mxu3  ;;  %v997_v51 = vadd.f32 %v996_v10, %v771_v61 }
 0x15b   : > { %2057 = vst.msk [vmem:[%s2894_s27 + $0x54] sm:$0xf] %vm2035_vm5, %v2024_v60  ;;  %v1925_v2 = vadd.f32 %v1878_v57, %v1305_v59  ;;  %v1001_v0 = vpop.f32.mrf.mxu1 }
 0x15c   : > { %v1306_v5 = vadd.f32 %v1260_v50, %v997_v51 }
 0x15d   : > { %v1961_v53 = vadd.f32 %v3142_v46, %v1925_v2 }
 0x15f   : > { %v1993_v4 = vmax.f32 %v1961_v53, 0.0 }
 0x161   : > { %v2025_v55 = vpack.c.bf16 %v1993_v4, %v1993_v4  ;;  %v774_v6 = vpop.f32.mrf.mxu0  ;;  %v1265_v7 = vpop.f32.mrf.mxu2 }
 0x162   : > { %v1880_v1 = vpop.f32.mrf.mxu3  ;;  %v1000_v8 = vadd.f32 %v999_v52, %v774_v6 }
 0x163   : > { %2058 = vst.msk [vmem:[%s2894_s27 + $0x58] sm:$0xf] %vm2035_vm5, %v2025_v55  ;;  %v1926_v62 = vadd.f32 %v1880_v1, %v1306_v5  ;;  %v1004_v15 = vpop.f32.mrf.mxu1 }
 0x164   : > { %v1307_v11 = vadd.f32 %v1263_v63, %v1000_v8 }
 0x165   : > { %v1962_v3 = vadd.f32 %v3142_v46, %v1926_v62 }
 0x167   : > { %v1994_v9 = vmax.f32 %v1962_v3, 0.0 }
 0x169   : > { %v2026_v12 = vpack.c.bf16 %v1994_v9, %v1994_v9  ;;  %v776_v13 = vpop.f32.mrf.mxu0  ;;  %v1268_v20 = vpop.f32.mrf.mxu2 }
 0x16a   : > { %v1883_v14 = vpop.f32.mrf.mxu3  ;;  %v1002_v18 = vadd.f32 %v1001_v0, %v776_v13 }
 0x16b   : > { %2059 = vst.msk [vmem:[%s2894_s27 + $0x5c] sm:$0xf] %vm2035_vm5, %v2026_v12  ;;  %v1927_v17 = vadd.f32 %v1883_v14, %v1307_v11  ;;  %v1006_v27 = vpop.f32.mrf.mxu1 }
 0x16c   : > { %v1308_v21 = vadd.f32 %v1265_v7, %v1002_v18 }
 0x16d   : > { %v1963_v16 = vadd.f32 %v3142_v46, %v1927_v17 }
 0x16f   : > { %v1995_v19 = vmax.f32 %v1963_v16, 0.0 }
 0x171   : > { %v2027_v22 = vpack.c.bf16 %v1995_v19, %v1995_v19  ;;  %v779_v23 = vpop.f32.mrf.mxu0  ;;  %v1270_v32 = vpop.f32.mrf.mxu2 }
 0x172   : > { %v1885_v24 = vpop.f32.mrf.mxu3  ;;  %v1005_v26 = vadd.f32 %v1004_v15, %v779_v23 }
 0x173   : > { %2060 = vst.msk [vmem:[%s2894_s27 + $0x60] sm:$0xf] %vm2035_vm5, %v2027_v22  ;;  %v1928_v25 = vadd.f32 %v1885_v24, %v1308_v21  ;;  %v1009_v43 = vpop.f32.mrf.mxu1 }
 0x174   : > { %v1309_v31 = vadd.f32 %v1268_v20, %v1005_v26 }
 0x175   : > { %v1964_v28 = vadd.f32 %v3142_v46, %v1928_v25 }
 0x177   : > { %v1996_v29 = vmax.f32 %v1964_v28, 0.0 }
 0x179   : > { %v2028_v36 = vpack.c.bf16 %v1996_v29, %v1996_v29  ;;  %v781_v39 = vpop.f32.mrf.mxu0  ;;  %v1273_v10 = vpop.f32.mrf.mxu2 }
 0x17a   : > { %v1888_v41 = vpop.f32.mrf.mxu3  ;;  %v1007_v42 = vadd.f32 %v1006_v27, %v781_v39 }
 0x17b   : > { %2061 = vst.msk [vmem:[%s2894_s27 + $0x64] sm:$0xf] %vm2035_vm5, %v2028_v36  ;;  %v1929_v38 = vadd.f32 %v1888_v41, %v1309_v31  ;;  %v1011_v54 = vpop.f32.mrf.mxu1 }
 0x17c   : > { %v1310_v30 = vadd.f32 %v1270_v32, %v1007_v42 }
 0x17d   : > { %v1965_v35 = vadd.f32 %v3142_v46, %v1929_v38 }
 0x17f   : > { %v1997_v44 = vmax.f32 %v1965_v35, 0.0 }
 0x181   : > { %v2029_v45 = vpack.c.bf16 %v1997_v44, %v1997_v44  ;;  %v784_v37 = vpop.f32.mrf.mxu0  ;;  %v1275_v59 = vpop.f32.mrf.mxu2 }
 0x182   : > { %v1890_v47 = vpop.f32.mrf.mxu3  ;;  %v1010_v49 = vadd.f32 %v1009_v43, %v784_v37 }
 0x183   : > { %2062 = vst.msk [vmem:[%s2894_s27 + $0x68] sm:$0xf] %vm2035_vm5, %v2029_v45  ;;  %v1930_v48 = vadd.f32 %v1890_v47, %v1310_v30  ;;  %v1014_v51 = vpop.f32.mrf.mxu1 }
 0x184   : > { %v1311_v50 = vadd.f32 %v1273_v10, %v1010_v49 }
 0x185   : > { %v1966_v33 = vadd.f32 %v3142_v46, %v1930_v48 }
 0x187   : > { %v1998_v40 = vmax.f32 %v1966_v33, 0.0 }
 0x189   : > { %v2030_v34 = vpack.c.bf16 %v1998_v40, %v1998_v40  ;;  %v786_v56 = vpop.f32.mrf.mxu0  ;;  %v1278_v6 = vpop.f32.mrf.mxu2 }
 0x18a   : > { %v1893_v52 = vpop.f32.mrf.mxu3  ;;  %v1012_v61 = vadd.f32 %v1011_v54, %v786_v56 }
 0x18b   : > { %2063 = vst.msk [vmem:[%s2894_s27 + $0x6c] sm:$0xf] %vm2035_vm5, %v2030_v34  ;;  %v1931_v58 = vadd.f32 %v1893_v52, %v1311_v50  ;;  %v1016_v11 = vpop.f32.mrf.mxu1 }
 0x18c   : > { %v1312_v2 = vadd.f32 %v1275_v59, %v1012_v61 }
 0x18d   : > { %v1967_v60 = vadd.f32 %v3142_v46, %v1931_v58 }
 0x18f   : > { %v1999_v57 = vmax.f32 %v1967_v60, 0.0 }
 0x191   : > { %v2031_v63 = vpack.c.bf16 %v1999_v57, %v1999_v57  ;;  %v789_v53 = vpop.f32.mrf.mxu0  ;;  %v1280_v15 = vpop.f32.mrf.mxu2 }
 0x192   : > { %v1895_v4 = vpop.f32.mrf.mxu3  ;;  %v1015_v55 = vadd.f32 %v1014_v51, %v789_v53 }
 0x193   : > { %2064 = vst.msk [vmem:[%s2894_s27 + $0x70] sm:$0xf] %vm2035_vm5, %v2031_v63  ;;  %v1932_v0 = vadd.f32 %v1895_v4, %v1312_v2 }
 0x194   : > { %v1313_v62 = vadd.f32 %v1278_v6, %v1015_v55 }
 0x195   : > { %v1968_v5 = vadd.f32 %v3142_v46, %v1932_v0 }
 0x197   : > { %v2000_v1 = vmax.f32 %v1968_v5, 0.0 }
 0x199   : > { %v2032_v8 = vpack.c.bf16 %v2000_v1, %v2000_v1  ;;  %v791_v3 = vpop.f32.mrf.mxu0 }
 0x19a   : > { %v1898_v7 = vpop.f32.mrf.mxu3  ;;  %v1017_v13 = vadd.f32 %v1016_v11, %v791_v3 }
 0x19b   : > { %2065 = vst.msk [vmem:[%s2894_s27 + $0x74] sm:$0xf] %vm2035_vm5, %v2032_v8  ;;  %v1933_v9 = vadd.f32 %v1898_v7, %v1313_v62 }
 0x19c   : > { %v1314_v16 = vadd.f32 %v1280_v15, %v1017_v13 }
 0x19d   : > { %v1969_v12 = vadd.f32 %v3142_v46, %v1933_v9 }
 0x19f   : > { %v2001_v14 = vmax.f32 %v1969_v12, 0.0 }
 0x1a1   : > { %v2033_v17 = vpack.c.bf16 %v2001_v14, %v2001_v14 }
 0x1a2   : > { %v1900_v18 = vpop.f32.mrf.mxu3 }
 0x1a3   : > { %2066 = vst.msk [vmem:[%s2894_s27 + $0x78] sm:$0xf] %vm2035_vm5, %v2033_v17  ;;  %v1934_v20 = vadd.f32 %v1900_v18, %v1314_v16 }
 0x1a5   : > { %v1970_v19 = vadd.f32 %v3142_v46, %v1934_v20 }
 0x1a7   : > { %v2002_v22 = vmax.f32 %v1970_v19, 0.0 }
 0x1a9   : > { %v2034_v21 = vpack.c.bf16 %v2002_v22, %v2002_v22 }
 0x1ab   : > { %2067 = vst.msk [vmem:[%s2894_s27 + $0x7c] sm:$0xf] %vm2035_vm5, %v2034_v21 }
 0x1ac PF: > { %s13_s16 = sadd.s32 1, %s2578_s16   ;;  %s3201_s12 = smov %s2570_s14 }
 0x1ad   : > { %p10_p7 = scmp.ge.s32.totalorder %s13_s16, 10   ;;  %s3202_s13 = smov %s2574_s15 }
 0x1ae   : > { %s3203_s14 = smov %s3206_s17  ;;  %s3204_s15 = smov %s3210_s18 }
 0x1af   :  { %12 = sbr.rel (!%p10_p7) target bundleno = 3 (0x3), region = 67 }

</bundles_post_ra>
